<compile_context>
chip_gen: v5e
topology: v5e:2x2
jax: 0.10.0
libtpu: 0.0.40
codegen_flags: <defaults>
</compile_context>

<pallas_src>
import jax
import jax.numpy as jnp
from jax.experimental import pallas as pl
from jax.experimental.pallas import tpu as pltpu

IN_DIM = 784   # 1*28*28
HID = 256


def _round_up(n, m):
    return ((n + m - 1) // m) * m


def _pick_batch_tile(B):
    """Batch tile: multiple of 128; >=2 tiles when B>128; grows to 1024."""
    if B <= 128:
        return 128
    return min(1024, _round_up(-(-B // 8), 128))


def _leaky_relu(x, slope=0.2):
    return jnp.where(x > 0, x, slope * x)


def discriminator_kernel(x_ref, w1_ref, b1_ref, w2_ref, b2_ref, w3_ref, b3_ref,
                         o_ref):
    """One batch tile of the whole MLP.

    x_ref : (TB, 784) f32      w1_ref : (784, 256) bf16   b1_ref : (1, 256) f32
    w2_ref: (256, 256) bf16    b2_ref : (1, 256)   f32
    w3_ref: (1, 256)   bf16    b3_ref : (1, 1)     f32
    o_ref : (1, TB)    f32     (sigmoid output, one value per batch row)
    """
    # In-kernel cast: x stays a single f32 HBM read, no wrapper pad/cast pass.
    x = x_ref[...].astype(jnp.bfloat16)

    # Layer 1: Linear(784->256) + LeakyReLU(0.2)   (bf16 MXU, f32 accumulate)
    h1 = jnp.dot(x, w1_ref[...], preferred_element_type=jnp.float32)
    h1 = _leaky_relu(h1 + b1_ref[...])

    # Layer 2: Linear(256->256) + LeakyReLU(0.2)
    h2 = jnp.dot(h1.astype(jnp.bfloat16), w2_ref[...],
                 preferred_element_type=jnp.float32)
    h2 = _leaky_relu(h2 + b2_ref[...])

    # Layer 3: single real output column, produced directly as a (1, TB) row
    # (q.k^T-style contraction) -> lane-dense unmasked store, tiny writeback.
    z = jnp.einsum("od,bd->ob", w3_ref[...], h2.astype(jnp.bfloat16),
                   preferred_element_type=jnp.float32)          # (1, TB)
    z = z + b3_ref[...]
    # Sigmoid: EUP exp + EUP approx reciprocal (error ~1e-3, within tolerance).
    o_ref[...] = pl.reciprocal(1.0 + jnp.exp(-z), approx=True)


def pack_params(params):
    """Cast raw f32 params into the kernel layout (no zero padding needed)."""
    w1, b1, w2, b2, w3, b3 = params
    return (w1.astype(jnp.bfloat16), b1.astype(jnp.float32),
            w2.astype(jnp.bfloat16), b2.astype(jnp.float32),
            w3.T.astype(jnp.bfloat16),          # (1, 256) row
            b3.astype(jnp.float32))             # (1, 1)


def discriminator_forward(x, packed_params):
    """x: (B, 1, 28, 28) or (B, 784). Returns (B,) float32."""
    B = x.shape[0]
    w1, b1, w2, b2, w3, b3 = packed_params

    # Flatten (== x.view(B, 784)); keep f32 — the bf16 cast happens in-kernel.
    x2 = x.reshape(B, IN_DIM).astype(jnp.float32)

    TB = _pick_batch_tile(B)
    B_pad = _round_up(B, TB)
    if B_pad != B:
        x2 = jnp.pad(x2, ((0, B_pad - B), (0, 0)))

    grid = (B_pad // TB,)
    resident = lambda shape: pl.BlockSpec(shape, lambda i: (0, 0))

    out = pl.pallas_call(
        discriminator_kernel,
        out_shape=jax.ShapeDtypeStruct((1, B_pad), jnp.float32),
        grid=grid,
        in_specs=[
            pl.BlockSpec((TB, IN_DIM), lambda i: (i, 0)),   # x: tiled on batch
            resident((IN_DIM, HID)), resident((1, HID)),     # layer 1
            resident((HID, HID)),    resident((1, HID)),     # layer 2
            resident((1, HID)),      resident((1, 1)),       # layer 3 (row + bias)
        ],
        out_specs=pl.BlockSpec((1, TB), lambda i: (0, i)),
        compiler_params=pltpu.CompilerParams(
            dimension_semantics=("parallel",),
            vmem_limit_bytes=32 << 20,
        ),
    )(x2, w1, b1, w2, b2, w3, b3)

    # Padded batch rows hold garbage (e.g. sigmoid of bias) -> slice before use.
    return out[0, :B]


def init_params(key):
    """Deterministic init mimicking PyTorch Linear default U[-1/sqrt(fan_in), +]."""
    def linear(key, fan_in, fan_out):
        kw, kb = jax.random.split(key)
        bound = 1.0 / jnp.sqrt(fan_in)
        # stored already transposed: (in, out)
        w = jax.random.uniform(kw, (fan_in, fan_out), jnp.float32, -bound, bound)
        b = jax.random.uniform(kb, (1, fan_out), jnp.float32, -bound, bound)
        return w, b

    k1, k2, k3 = jax.random.split(key, 3)
    w1, b1 = linear(k1, IN_DIM, HID)
    w2, b2 = linear(k2, HID, HID)
    w3, b3 = linear(k3, HID, 1)
    return (w1, b1, w2, b2, w3, b3)


def reference_forward(x, params):
    """Pure-JAX reference with the same bf16 matmul / f32 elementwise recipe."""
    w1, b1, w2, b2, w3, b3 = params
    B = x.shape[0]
    bf = jnp.bfloat16
    h = x.reshape(B, IN_DIM).astype(jnp.float32)

    def lrelu(v):
        return jnp.where(v > 0, v, 0.2 * v)

    h1 = lrelu(jnp.dot(h.astype(bf), w1.astype(bf),
                       preferred_element_type=jnp.float32) + b1)
    h2 = lrelu(jnp.dot(h1.astype(bf), w2.astype(bf),
                       preferred_element_type=jnp.float32) + b2)
    z = jnp.dot(h2.astype(bf), w3.astype(bf),
                preferred_element_type=jnp.float32) + b3
    return jax.nn.sigmoid(z)[:, 0]


if __name__ == "__main__":
    key = jax.random.PRNGKey(0)
    kx, kp = jax.random.split(key)

    B = 2
    # MNIST-style NCHW input, as the PyTorch module implies (784 = 1*28*28)
    x = jax.random.normal(kx, (B, 1, 28, 28), jnp.float32)
    params = init_params(kp)
    packed = pack_params(params)

    out = discriminator_forward(x, packed)
    out = jax.block_until_ready(out)

    ref = reference_forward(x, params)
    assert out.shape == (B,), out.shape
    assert jnp.allclose(out, ref, atol=5e-3, rtol=5e-3), (out, ref)

    print("KERNEL_OK")
</pallas_src>

<mosaic_0001>
module attributes {stable_mosaic.version = 11 : i64} {
  func.func @discriminator_kernel(%arg0: i32, %arg1: memref<128x784xf32, #tpu.memory_space<vmem>>, %arg2: memref<784x256xbf16, #tpu.memory_space<vmem>>, %arg3: memref<1x256xf32, #tpu.memory_space<vmem>>, %arg4: memref<256x256xbf16, #tpu.memory_space<vmem>>, %arg5: memref<1x256xf32, #tpu.memory_space<vmem>>, %arg6: memref<1x256xbf16, #tpu.memory_space<vmem>>, %arg7: memref<1x1xf32, #tpu.memory_space<vmem>>, %arg8: memref<1x128xf32, #tpu.memory_space<vmem>>) attributes {dimension_semantics = [#tpu.dimension_semantics<parallel>], iteration_bounds = array<i64: 1>, scalar_prefetch = 0 : i64, scratch_operands = 0 : i64, tpu.core_type = #tpu.core_type<tc>, window_params = [{transform_indices = @transform_0, window_bounds = array<i64: 128, 784>}, {pipeline_mode = #tpu.pipeline_mode<synchronous>, transform_indices = @transform_1, window_bounds = array<i64: 784, 256>}, {pipeline_mode = #tpu.pipeline_mode<synchronous>, transform_indices = @transform_2, window_bounds = array<i64: 1, 256>}, {pipeline_mode = #tpu.pipeline_mode<synchronous>, transform_indices = @transform_3, window_bounds = array<i64: 256, 256>}, {pipeline_mode = #tpu.pipeline_mode<synchronous>, transform_indices = @transform_4, window_bounds = array<i64: 1, 256>}, {pipeline_mode = #tpu.pipeline_mode<synchronous>, transform_indices = @transform_5, window_bounds = array<i64: 1, 256>}, {pipeline_mode = #tpu.pipeline_mode<synchronous>, transform_indices = @transform_6, window_bounds = array<i64: 1, 1>}, {transform_indices = @transform_7, window_bounds = array<i64: 1, 128>}]} {
    %c0 = arith.constant 0 : index
    %c0_0 = arith.constant 0 : index
    %0 = vector.load %arg1[%c0, %c0_0] : memref<128x784xf32, #tpu.memory_space<vmem>>, vector<128x784xf32>
    %1 = arith.truncf %0 : vector<128x784xf32> to vector<128x784xbf16>
    %c0_1 = arith.constant 0 : index
    %c0_2 = arith.constant 0 : index
    %2 = vector.load %arg2[%c0_1, %c0_2] : memref<784x256xbf16, #tpu.memory_space<vmem>>, vector<784x256xbf16>
    %cst = arith.constant dense<0.000000e+00> : vector<128x256xf32>
    %3 = tpu.matmul %1, %2, %cst {dimension_numbers = #tpu.dot_dimension_numbers<[1], [0], [0], [1], [0, 0, 1, 1], [], []>} : vector<128x784xbf16>, vector<784x256xbf16>, vector<128x256xf32> -> vector<128x256xf32>
    %c0_3 = arith.constant 0 : index
    %c0_4 = arith.constant 0 : index
    %4 = vector.load %arg3[%c0_3, %c0_4] : memref<1x256xf32, #tpu.memory_space<vmem>>, vector<1x256xf32>
    %5 = vector.broadcast %4 : vector<1x256xf32> to vector<128x256xf32>
    %6 = arith.addf %3, %5 : vector<128x256xf32>
    %cst_5 = arith.constant 0.000000e+00 : f32
    %7 = vector.broadcast %cst_5 : f32 to vector<128x256xf32>
    %8 = arith.cmpf ogt, %6, %7 : vector<128x256xf32>
    %cst_6 = arith.constant 2.000000e-01 : f32
    %9 = vector.broadcast %cst_6 : f32 to vector<128x256xf32>
    %10 = arith.mulf %9, %6 : vector<128x256xf32>
    %11 = arith.select %8, %6, %10 : vector<128x256xi1>, vector<128x256xf32>
    %12 = arith.truncf %11 : vector<128x256xf32> to vector<128x256xbf16>
    %c0_7 = arith.constant 0 : index
    %c0_8 = arith.constant 0 : index
    %13 = vector.load %arg4[%c0_7, %c0_8] : memref<256x256xbf16, #tpu.memory_space<vmem>>, vector<256x256xbf16>
    %cst_9 = arith.constant dense<0.000000e+00> : vector<128x256xf32>
    %14 = tpu.matmul %12, %13, %cst_9 {dimension_numbers = #tpu.dot_dimension_numbers<[1], [0], [0], [1], [0, 0, 1, 1], [], []>} : vector<128x256xbf16>, vector<256x256xbf16>, vector<128x256xf32> -> vector<128x256xf32>
    %c0_10 = arith.constant 0 : index
    %c0_11 = arith.constant 0 : index
    %15 = vector.load %arg5[%c0_10, %c0_11] : memref<1x256xf32, #tpu.memory_space<vmem>>, vector<1x256xf32>
    %16 = vector.broadcast %15 : vector<1x256xf32> to vector<128x256xf32>
    %17 = arith.addf %14, %16 : vector<128x256xf32>
    %cst_12 = arith.constant 0.000000e+00 : f32
    %18 = vector.broadcast %cst_12 : f32 to vector<128x256xf32>
    %19 = arith.cmpf ogt, %17, %18 : vector<128x256xf32>
    %cst_13 = arith.constant 2.000000e-01 : f32
    %20 = vector.broadcast %cst_13 : f32 to vector<128x256xf32>
    %21 = arith.mulf %20, %17 : vector<128x256xf32>
    %22 = arith.select %19, %17, %21 : vector<128x256xi1>, vector<128x256xf32>
    %c0_14 = arith.constant 0 : index
    %c0_15 = arith.constant 0 : index
    %23 = vector.load %arg6[%c0_14, %c0_15] : memref<1x256xbf16, #tpu.memory_space<vmem>>, vector<1x256xbf16>
    %24 = arith.truncf %22 : vector<128x256xf32> to vector<128x256xbf16>
    "tpu.trace_start"() <{level = 10 : i32, message = "od,bd->ob"}> : () -> ()
    %cst_16 = arith.constant dense<0.000000e+00> : vector<1x128xf32>
    %25 = tpu.matmul %23, %24, %cst_16 {dimension_numbers = #tpu.dot_dimension_numbers<[1], [1], [0], [0], [0, 0, 1, 0], [], []>} : vector<1x256xbf16>, vector<128x256xbf16>, vector<1x128xf32> -> vector<1x128xf32>
    "tpu.trace_stop"() : () -> ()
    %c0_17 = arith.constant 0 : index
    %c0_18 = arith.constant 0 : index
    %26 = vector.load %arg7[%c0_17, %c0_18] : memref<1x1xf32, #tpu.memory_space<vmem>>, vector<1x1xf32>
    %27 = vector.broadcast %26 : vector<1x1xf32> to vector<1x128xf32>
    %28 = arith.addf %25, %27 : vector<1x128xf32>
    %cst_19 = arith.constant 0.000000e+00 : f32
    %29 = vector.broadcast %cst_19 : f32 to vector<1x128xf32>
    %30 = arith.subf %29, %28 : vector<1x128xf32>
    %31 = math.exp %30 : vector<1x128xf32>
    %cst_20 = arith.constant 1.000000e+00 : f32
    %32 = vector.broadcast %cst_20 : f32 to vector<1x128xf32>
    %33 = arith.addf %32, %31 : vector<1x128xf32>
    %34 = tpu.reciprocal %33 {approx = true} : vector<1x128xf32> -> vector<1x128xf32>
    %c0_21 = arith.constant 0 : index
    %c0_22 = arith.constant 0 : index
    %35 = vector.load %arg8[%c0_21, %c0_22] : memref<1x128xf32, #tpu.memory_space<vmem>>, vector<1x128xf32>
    tpu.vector_store %arg8[%c0_21, %c0_22], %34 {strides = array<i32>} : memref<1x128xf32, #tpu.memory_space<vmem>>, vector<1x128xf32>,
    return
  }
  func.func @transform_0(%arg0: i32) -> (i32, i32) {
    %c0_i32 = arith.constant 0 : i32
    %c0_i32_0 = arith.constant 0 : i32
    return %arg0, %c0_i32 : i32, i32
  }
  func.func @transform_1(%arg0: i32) -> (i32, i32) {
    %c0_i32 = arith.constant 0 : i32
    %c0_i32_0 = arith.constant 0 : i32
    %c0_i32_1 = arith.constant 0 : i32
    return %c0_i32, %c0_i32_0 : i32, i32
  }
  func.func @transform_2(%arg0: i32) -> (i32, i32) {
    %c0_i32 = arith.constant 0 : i32
    %c0_i32_0 = arith.constant 0 : i32
    %c0_i32_1 = arith.constant 0 : i32
    return %c0_i32, %c0_i32_0 : i32, i32
  }
  func.func @transform_3(%arg0: i32) -> (i32, i32) {
    %c0_i32 = arith.constant 0 : i32
    %c0_i32_0 = arith.constant 0 : i32
    %c0_i32_1 = arith.constant 0 : i32
    return %c0_i32, %c0_i32_0 : i32, i32
  }
  func.func @transform_4(%arg0: i32) -> (i32, i32) {
    %c0_i32 = arith.constant 0 : i32
    %c0_i32_0 = arith.constant 0 : i32
    %c0_i32_1 = arith.constant 0 : i32
    return %c0_i32, %c0_i32_0 : i32, i32
  }
  func.func @transform_5(%arg0: i32) -> (i32, i32) {
    %c0_i32 = arith.constant 0 : i32
    %c0_i32_0 = arith.constant 0 : i32
    %c0_i32_1 = arith.constant 0 : i32
    return %c0_i32, %c0_i32_0 : i32, i32
  }
  func.func @transform_6(%arg0: i32) -> (i32, i32) {
    %c0_i32 = arith.constant 0 : i32
    %c0_i32_0 = arith.constant 0 : i32
    %c0_i32_1 = arith.constant 0 : i32
    return %c0_i32, %c0_i32_0 : i32, i32
  }
  func.func @transform_7(%arg0: i32) -> (i32, i32) {
    %c0_i32 = arith.constant 0 : i32
    %c0_i32_0 = arith.constant 0 : i32
    return %c0_i32, %arg0 : i32, i32
  }
}

</mosaic_0001>

<bundles_post_ra>
// kernel: tpu_custom_call.1
= control target key start
LH: loop header
LB: loop body
LE: loop exit
PB: predicated region body
PF: predicated region fallthrough
CT: control target
= control target key end

     0   :  { %s4715_s0 = inlined_call_operand.vmem [shape: f32[128,784], index: 0, kind: input, shape index: {}]   ;;  %s4716_s1 = inlined_call_operand.vmem [shape: bf16[784,256], index: 1, kind: input, shape index: {}]   ;;  %s4717_s2 = inlined_call_operand.vmem [shape: f32[1,256], index: 2, kind: input, shape index: {}]   ;;  %s4718_s3 = inlined_call_operand.vmem [shape: bf16[256,256], index: 3, kind: input, shape index: {}]   ;;  %s4719_s4 = inlined_call_operand.vmem [shape: f32[1,256], index: 4, kind: input, shape index: {}]   ;;  %s4720_s5 = inlined_call_operand.vmem [shape: bf16[1,256], index: 5, kind: input, shape index: {}]   ;;  %s4721_s6 = inlined_call_operand.<no memory space> [shape: f32[1,1], index: 6, kind: input, shape index: {}]   ;;  %s4722_s7 = inlined_call_operand.hbm [shape: f32[1,128], index: 7, kind: output, shape index: {}]  }
   0x1   :  { %v12_v0 = vstv %s4721_s6 }
   0x2   :  { %13 = vst [vmem:[#allocation2] sm:$0x1] %v12_v0 }
   0x3   :  { %v2241_v1 = vld [vmem:[%s4716_s1 + $0x70] sm:$0xf]  ;;  %v2734_v2 = vld [vmem:[%s4716_s1 + $0x74] sm:$0xf0]  ;;  %v2233_v6 = vld [vmem:[%s4716_s1 + $0x60] sm:$0xf] }
   0x4   :  { %v2305_v3 = vld [vmem:[%s4716_s1 + $0xf0] sm:$0xf]  ;;  %v2242_v4 = vor.u32 %v2734_v2, %v2241_v1  ;;  %v2750_v5 = vld [vmem:[%s4716_s1 + $0xf4] sm:$0xf0]  ;;  %v2732_v7 = vld [vmem:[%s4716_s1 + $0x64] sm:$0xf0] }
   0x5   :  { %v2306_v8 = vor.u32 %v2750_v5, %v2305_v3  ;;  %v2297_v9 = vld [vmem:[%s4716_s1 + $0xe0] sm:$0xf]  ;;  %v2748_v10 = vld [vmem:[%s4716_s1 + $0xe4] sm:$0xf0]  ;;  %v2234_v11 = vor.u32 %v2732_v7, %v2233_v6  ;;  %v2225_v13 = vld [vmem:[%s4716_s1 + $0x50] sm:$0xf] }
   0x6   :  { %817 = vmatpush.bf16.msra.mxu0 %v2242_v4  ;;  %2849 = vmatpush.bf16.msra.mxu2 %v2242_v4  ;;  %v2298_v12 = vor.u32 %v2748_v10, %v2297_v9  ;;  %v2730_v14 = vld [vmem:[%s4716_s1 + $0x54] sm:$0xf0]  ;;  %v2289_v15 = vld [vmem:[%s4716_s1 + $0xd0] sm:$0xf]  ;;  %v2217_v19 = vld [vmem:[%s4716_s1 + $0x40] sm:$0xf] }
   0x7   :  { %866 = vmatpush.bf16.msra.mxu1 %v2306_v8  ;;  %2857 = vmatpush.bf16.msra.mxu3 %v2306_v8  ;;  %v2746_v16 = vld [vmem:[%s4716_s1 + $0xd4] sm:$0xf0]  ;;  %v2226_v17 = vor.u32 %v2730_v14, %v2225_v13  ;;  %v2728_v20 = vld [vmem:[%s4716_s1 + $0x44] sm:$0xf0]  ;;  %v2281_v21 = vld [vmem:[%s4716_s1 + $0xc0] sm:$0xf] }
   0x8   :  { %v2290_v18 = vor.u32 %v2746_v16, %v2289_v15  ;;  %v2744_v22 = vld [vmem:[%s4716_s1 + $0xc4] sm:$0xf0]  ;;  %v2218_v23 = vor.u32 %v2728_v20, %v2217_v19  ;;  %v2209_v25 = vld [vmem:[%s4716_s1 + $0x30] sm:$0xf]  ;;  %v2726_v26 = vld [vmem:[%s4716_s1 + $0x34] sm:$0xf0] }
   0x9   :  { %v2282_v24 = vor.u32 %v2744_v22, %v2281_v21  ;;  %v2273_v27 = vld [vmem:[%s4716_s1 + $0xb0] sm:$0xf]  ;;  %v2742_v28 = vld [vmem:[%s4716_s1 + $0xb4] sm:$0xf0] }
   0xa   :  { %818 = vmatpush.bf16.msra.mxu0 %v2234_v11  ;;  %2850 = vmatpush.bf16.msra.mxu2 %v2234_v11 }
   0xb   :  { %867 = vmatpush.bf16.msra.mxu1 %v2298_v12  ;;  %2858 = vmatpush.bf16.msra.mxu3 %v2298_v12 }
   0xe   :  { %819 = vmatpush.bf16.msra.mxu0 %v2226_v17  ;;  %2851 = vmatpush.bf16.msra.mxu2 %v2226_v17 }
   0xf   :  { %868 = vmatpush.bf16.msra.mxu1 %v2290_v18  ;;  %2859 = vmatpush.bf16.msra.mxu3 %v2290_v18 }
  0x10   :  { %14 = vsyncpa [#allocation4], 0  ;;  %v2210_v29 = vor.u32 %v2726_v26, %v2209_v25  ;;  %v2274_v30 = vor.u32 %v2742_v28, %v2273_v27  ;;  %v2201_v31 = vld [vmem:[%s4716_s1 + $0x20] sm:$0xf]  ;;  %v2724_v32 = vld [vmem:[%s4716_s1 + $0x24] sm:$0xf0] }
  0x11   :  { %v2265_v33 = vld [vmem:[%s4716_s1 + $0xa0] sm:$0xf]  ;;  %v2740_v34 = vld [vmem:[%s4716_s1 + $0xa4] sm:$0xf0]  ;;  %v2202_v35 = vor.u32 %v2724_v32, %v2201_v31  ;;  %v2193_v37 = vld [vmem:[%s4716_s1 + $0x10] sm:$0xf] }
  0x12   :  { %820 = vmatpush.bf16.msra.mxu0 %v2218_v23  ;;  %2852 = vmatpush.bf16.msra.mxu2 %v2218_v23  ;;  %v2266_v36 = vor.u32 %v2740_v34, %v2265_v33  ;;  %v2722_v38 = vld [vmem:[%s4716_s1 + $0x14] sm:$0xf0]  ;;  %v2257_v39 = vld [vmem:[%s4716_s1 + $0x90] sm:$0xf]  ;;  %v2185_v42 = vld [vmem:[%s4716_s1] sm:$0xf] }
  0x13   :  { %869 = vmatpush.bf16.msra.mxu1 %v2282_v24  ;;  %2860 = vmatpush.bf16.msra.mxu3 %v2282_v24  ;;  %v2738_v40 = vld [vmem:[%s4716_s1 + $0x94] sm:$0xf0]  ;;  %v2194_v41 = vor.u32 %v2722_v38, %v2193_v37  ;;  %v2720_v44 = vld [vmem:[%s4716_s1 + $0x4] sm:$0xf0]  ;;  %v2249_v45 = vld [vmem:[%s4716_s1 + $0x80] sm:$0xf] }
  0x14   :  { %v2258_v43 = vor.u32 %v2738_v40, %v2257_v39  ;;  %v2736_v46 = vld [vmem:[%s4716_s1 + $0x84] sm:$0xf0]  ;;  %v30_v47 = vld [vmem:[%s4715_s0] sm:$0xff]  ;;  %v37_v48 = vld [vmem:[%s4715_s0 + $0x38] sm:$0xff]  ;;  %v2186_v53 = vor.u32 %v2720_v44, %v2185_v42  ;;  %vm792_vm0 = vcmask 130048  }
  0x15   :  { %v2369_v49 = vld [vmem:[%s4716_s1 + $0x170] sm:$0xf]  ;;  %v2766_v50 = vld [vmem:[%s4716_s1 + $0x174] sm:$0xf0]  ;;  %v107_v55 = vld [vmem:[%s4715_s0 + $0x268] sm:$0xff]  ;;  %v2250_v57 = vor.u32 %v2736_v46, %v2249_v45  ;;  %v3079_v0 = vpack.c.bf16 %v37_v48, %v30_v47 }
  0x16   :  { %821 = vmatpush.bf16.msra.mxu0 %v2210_v29  ;;  %2853 = vmatpush.bf16.msra.mxu2 %v2210_v29  ;;  %v2433_v51 = vld [vmem:[%s4716_s1 + $0x1f0] sm:$0xf]  ;;  %v2782_v52 = vld [vmem:[%s4716_s1 + $0x1f4] sm:$0xf0]  ;;  %v31_v56 = vld [vmem:[%s4715_s0 + $0x8] sm:$0xff]  ;;  %v2370_v61 = vor.u32 %v2766_v50, %v2369_v49 }
  0x17   :  { %870 = vmatpush.bf16.msra.mxu1 %v2274_v30  ;;  %2861 = vmatpush.bf16.msra.mxu3 %v2274_v30  ;;  %v100_v54 = vld [vmem:[%s4715_s0 + $0x230] sm:$0xff]  ;;  %v38_v58 = vld [vmem:[%s4715_s0 + $0x40] sm:$0xff]  ;;  %v101_v59 = vld [vmem:[%s4715_s0 + $0x238] sm:$0xff]  ;;  %v2434_v62 = vor.u32 %v2782_v52, %v2433_v51 }
  0x18   :  { %v108_v60 = vld [vmem:[%s4715_s0 + $0x270] sm:$0xff]  ;;  %v2361_v63 = vld [vmem:[%s4716_s1 + $0x160] sm:$0xf]  ;;  %v3081_v1 = vpack.c.bf16 %v107_v55, %v100_v54  ;;  %v2764_v2 = vld [vmem:[%s4716_s1 + $0x164] sm:$0xf0]  ;;  %v3092_v5 = vpack.c.bf16 %v38_v58, %v31_v56 }
  0x19   :  { %v2425_v3 = vld [vmem:[%s4716_s1 + $0x1e0] sm:$0xf]  ;;  %v2780_v4 = vld [vmem:[%s4716_s1 + $0x1e4] sm:$0xf0]  ;;  %v3094_v6 = vpack.c.bf16 %v108_v60, %v101_v59  ;;  %v2362_v7 = vor.u32 %v2764_v2, %v2361_v63  ;;  %v2353_v9 = vld [vmem:[%s4716_s1 + $0x150] sm:$0xf] }
  0x1a   :  { %822 = vmatpush.bf16.msra.mxu0 %v2202_v35  ;;  %2854 = vmatpush.bf16.msra.mxu2 %v2202_v35  ;;  %v2426_v8 = vor.u32 %v2780_v4, %v2425_v3  ;;  %v2762_v10 = vld [vmem:[%s4716_s1 + $0x154] sm:$0xf0]  ;;  %v2417_v11 = vld [vmem:[%s4716_s1 + $0x1d0] sm:$0xf]  ;;  %v2345_v15 = vld [vmem:[%s4716_s1 + $0x140] sm:$0xf] }
  0x1b   :  { %871 = vmatpush.bf16.msra.mxu1 %v2266_v36  ;;  %2862 = vmatpush.bf16.msra.mxu3 %v2266_v36  ;;  %v2778_v12 = vld [vmem:[%s4716_s1 + $0x1d4] sm:$0xf0]  ;;  %v2354_v13 = vor.u32 %v2762_v10, %v2353_v9  ;;  %v2760_v16 = vld [vmem:[%s4716_s1 + $0x144] sm:$0xf0]  ;;  %v2409_v17 = vld [vmem:[%s4716_s1 + $0x1c0] sm:$0xf] }
  0x1c   :  { %v2418_v14 = vor.u32 %v2778_v12, %v2417_v11  ;;  %v2776_v18 = vld [vmem:[%s4716_s1 + $0x1c4] sm:$0xf0]  ;;  %v44_v19 = vld [vmem:[%s4715_s0 + $0x70] sm:$0xff]  ;;  %v2346_v21 = vor.u32 %v2760_v16, %v2345_v15  ;;  %v2758_v24 = vld [vmem:[%s4716_s1 + $0x134] sm:$0xf0] }
  0x1d   :  { %v51_v20 = vld [vmem:[%s4715_s0 + $0xa8] sm:$0xff]  ;;  %v2410_v22 = vor.u32 %v2776_v18, %v2409_v17  ;;  %v2337_v23 = vld [vmem:[%s4716_s1 + $0x130] sm:$0xf]  ;;  %v2774_v26 = vld [vmem:[%s4716_s1 + $0x1b4] sm:$0xf0] }
  0x1e   :  { %823 = vmatpush.bf16.msra.mxu0 %v2194_v41  ;;  %2855 = vmatpush.bf16.msra.mxu2 %v2194_v41  ;;  %v2401_v25 = vld [vmem:[%s4716_s1 + $0x1b0] sm:$0xf]  ;;  %v114_v27 = vld [vmem:[%s4715_s0 + $0x2a0] sm:$0xff]  ;;  %v121_v28 = vld [vmem:[%s4715_s0 + $0x2d8] sm:$0xff]  ;;  %v2338_v33 = vor.u32 %v2758_v24, %v2337_v23  ;;  %v3163_v36 = vpack.c.bf16 %v51_v20, %v44_v19 }
  0x1f   :  { %872 = vmatpush.bf16.msra.mxu1 %v2258_v43  ;;  %2863 = vmatpush.bf16.msra.mxu3 %v2258_v43  ;;  %v45_v29 = vld [vmem:[%s4715_s0 + $0x78] sm:$0xff]  ;;  %v52_v30 = vld [vmem:[%s4715_s0 + $0xb0] sm:$0xff]  ;;  %v115_v31 = vld [vmem:[%s4715_s0 + $0x2a8] sm:$0xff]  ;;  %v2402_v34 = vor.u32 %v2774_v26, %v2401_v25  ;;  %v3165_v37 = vpack.c.bf16 %v121_v28, %v114_v27 }
  0x20   :  { %v122_v32 = vld [vmem:[%s4715_s0 + $0x2e0] sm:$0xff]  ;;  %v2756_v38 = vld [vmem:[%s4716_s1 + $0x124] sm:$0xf0]  ;;  %v3176_v41 = vpack.c.bf16 %v52_v30, %v45_v29  ;;  %v2321_v43 = vld [vmem:[%s4716_s1 + $0x110] sm:$0xf] }
  0x21   :  { %v2329_v35 = vld [vmem:[%s4716_s1 + $0x120] sm:$0xf]  ;;  %v2772_v40 = vld [vmem:[%s4716_s1 + $0x1a4] sm:$0xf0]  ;;  %v3178_v42 = vpack.c.bf16 %v122_v32, %v115_v31  ;;  %v2754_v44 = vld [vmem:[%s4716_s1 + $0x114] sm:$0xf0] }
  0x22   :  { %824 = vmatpush.bf16.msra.mxu0 %v2186_v53  ;;  %2856 = vmatpush.bf16.msra.mxu2 %v2186_v53  ;;  %v2393_v39 = vld [vmem:[%s4716_s1 + $0x1a0] sm:$0xf]  ;;  %v2330_v45 = vor.u32 %v2756_v38, %v2329_v35  ;;  %v2385_v47 = vld [vmem:[%s4716_s1 + $0x190] sm:$0xf]  ;;  %v2798_v49 = vld [vmem:[%s4716_s1 + $0x274] sm:$0xf0]  ;;  %v2322_v60 = vor.u32 %v2754_v44, %v2321_v43 }
  0x23   :  { %873 = vmatpush.bf16.msra.mxu1 %v2250_v57  ;;  %2864 = vmatpush.bf16.msra.mxu3 %v2250_v57  ;;  %v2394_v46 = vor.u32 %v2772_v40, %v2393_v39  ;;  %v2497_v48 = vld [vmem:[%s4716_s1 + $0x270] sm:$0xf]  ;;  %v2770_v50 = vld [vmem:[%s4716_s1 + $0x194] sm:$0xf0]  ;;  %v2489_v55 = vld [vmem:[%s4716_s1 + $0x260] sm:$0xf] }
  0x24   :  { %v2498_v51 = vor.u32 %v2798_v49, %v2497_v48  ;;  %v2561_v52 = vld [vmem:[%s4716_s1 + $0x2f0] sm:$0xf]  ;;  %v2814_v53 = vld [vmem:[%s4716_s1 + $0x2f4] sm:$0xf0]  ;;  %v2796_v56 = vld [vmem:[%s4716_s1 + $0x264] sm:$0xf0] }
  0x25   :  { %825 = vmatmul.bf16.vlgmr.msra.gmra.mxu0 %v3079_v0  ;;  %850 = vmatmul.bf16.vlgmr.msra.gmra.mxu2 %v3081_v1  ;;  %v2562_v54 = vor.u32 %v2814_v53, %v2561_v52  ;;  %v2490_v57 = vor.u32 %v2796_v56, %v2489_v55  ;;  %v2553_v58 = vld [vmem:[%s4716_s1 + $0x2e0] sm:$0xf]  ;;  %v2812_v59 = vld [vmem:[%s4716_s1 + $0x2e4] sm:$0xf0]  ;;  %v2481_v63 = vld [vmem:[%s4716_s1 + $0x250] sm:$0xf] }
  0x26   :  { %915 = vmatpush.bf16.msrb.mxu2 %v2370_v61  ;;  %874 = vmatmul.bf16.vlgmr.msra.gmra.mxu1 %v3092_v5  ;;  %v2386_v61 = vor.u32 %v2770_v50, %v2385_v47  ;;  %v2794_v2 = vld [vmem:[%s4716_s1 + $0x254] sm:$0xf0]  ;;  %v2752_v3 = vld [vmem:[%s4716_s1 + $0x104] sm:$0xf0]  ;;  %v2377_v4 = vld [vmem:[%s4716_s1 + $0x180] sm:$0xf] }
  0x27   :  { %964 = vmatpush.bf16.msrb.mxu3 %v2434_v62  ;;  %1013 = vmatpush.bf16.msrb.mxu0 %v2498_v51  ;;  %v2313_v62 = vld [vmem:[%s4716_s1 + $0x100] sm:$0xf]  ;;  %v2545_v9 = vld [vmem:[%s4716_s1 + $0x2d0] sm:$0xf]  ;;  %v2810_v10 = vld [vmem:[%s4716_s1 + $0x2d4] sm:$0xf0]  ;;  %v2482_v11 = vor.u32 %v2794_v2, %v2481_v63 }
  0x28   :  { %899 = vmatmul.bf16.vlgmr.msra.gmra.mxu3 %v3094_v6  ;;  %1062 = vmatpush.bf16.msrb.mxu1 %v2562_v54  ;;  %v2314_v12 = vor.u32 %v2752_v3, %v2313_v62  ;;  %v2792_v15 = vld [vmem:[%s4716_s1 + $0x244] sm:$0xf0]  ;;  %v58_v16 = vld [vmem:[%s4715_s0 + $0xe0] sm:$0xff]  ;;  %v65_v17 = vld [vmem:[%s4715_s0 + $0x118] sm:$0xff]  ;;  %v2546_v18 = vor.u32 %v2810_v10, %v2545_v9 }
  0x29   :  { %v128_v19 = vld [vmem:[%s4715_s0 + $0x310] sm:$0xff]  ;;  %v135_v20 = vld [vmem:[%s4715_s0 + $0x348] sm:$0xff]  ;;  %v129_v23 = vld [vmem:[%s4715_s0 + $0x318] sm:$0xff]  ;;  %v3280_v28 = vpack.c.bf16 %v65_v17, %v58_v16 }
  0x2a   :  { %916 = vmatpush.bf16.msrb.mxu2 %v2362_v7  ;;  %v2768_v7 = vld [vmem:[%s4716_s1 + $0x184] sm:$0xf0]  ;;  %v136_v24 = vld [vmem:[%s4715_s0 + $0x350] sm:$0xff]  ;;  %v2537_v26 = vld [vmem:[%s4716_s1 + $0x2c0] sm:$0xf]  ;;  %v3282_v29 = vpack.c.bf16 %v135_v20, %v128_v19 }
  0x2b   :  { %965 = vmatpush.bf16.msrb.mxu3 %v2426_v8  ;;  %v2554_v8 = vor.u32 %v2812_v59, %v2553_v58  ;;  %1014 = vmatpush.bf16.msrb.mxu0 %v2490_v57  ;;  %v2808_v27 = vld [vmem:[%s4716_s1 + $0x2c4] sm:$0xf0]  ;;  %v3286_v31 = vpack.c.bf16 %v136_v24, %v129_v23  ;;  %v2529_v38 = vld [vmem:[%s4716_s1 + $0x2b0] sm:$0xf]  ;;  %v2806_v39 = vld [vmem:[%s4716_s1 + $0x2b4] sm:$0xf0] }
  0x2c   :  { %v2538_v32 = vor.u32 %v2808_v27, %v2537_v26  ;;  %v2457_v40 = vld [vmem:[%s4716_s1 + $0x220] sm:$0xf]  ;;  %v2788_v43 = vld [vmem:[%s4716_s1 + $0x224] sm:$0xf0]  ;;  %v2530_v44 = vor.u32 %v2806_v39, %v2529_v38  ;;  %v2449_v48 = vld [vmem:[%s4716_s1 + $0x210] sm:$0xf] }
  0x2d   :  { %1063 = vmatpush.bf16.msrb.mxu1 %v2554_v8  ;;  %v2804_v47 = vld [vmem:[%s4716_s1 + $0x2a4] sm:$0xf0]  ;;  %v2786_v49 = vld [vmem:[%s4716_s1 + $0x214] sm:$0xf0]  ;;  %v2513_v52 = vld [vmem:[%s4716_s1 + $0x290] sm:$0xf] }
  0x2e   :  { %917 = vmatpush.bf16.msrb.mxu2 %v2354_v13  ;;  %v2378_v13 = vor.u32 %v2768_v7, %v2377_v4  ;;  %v2450_v51 = vor.u32 %v2786_v49, %v2449_v48  ;;  %v2802_v53 = vld [vmem:[%s4716_s1 + $0x294] sm:$0xf0]  ;;  %v2441_v54 = vld [vmem:[%s4716_s1 + $0x200] sm:$0xf]  ;;  %v2784_v55 = vld [vmem:[%s4716_s1 + $0x204] sm:$0xf0] }
  0x2f   :  { %966 = vmatpush.bf16.msrb.mxu3 %v2418_v14  ;;  %v2473_v14 = vld [vmem:[%s4716_s1 + $0x240] sm:$0xf]  ;;  %1015 = vmatpush.bf16.msrb.mxu0 %v2482_v11  ;;  %v72_v56 = vld [vmem:[%s4715_s0 + $0x150] sm:$0xff]  ;;  %v79_v57 = vld [vmem:[%s4715_s0 + $0x188] sm:$0xff]  ;;  %v2514_v2 = vor.u32 %v2802_v53, %v2513_v52  ;;  %v2442_v3 = vor.u32 %v2784_v55, %v2441_v54 }
  0x30   :  { %v2474_v25 = vor.u32 %v2792_v15, %v2473_v14  ;;  %v73_v58 = vld [vmem:[%s4715_s0 + $0x158] sm:$0xff]  ;;  %v32_v59 = vld [vmem:[%s4715_s0 + $0x10] sm:$0xff]  ;;  %v2505_v4 = vld [vmem:[%s4716_s1 + $0x280] sm:$0xf]  ;;  %v3364_v8 = vpack.c.bf16 %v79_v57, %v72_v56 }
  0x31   :  { %1064 = vmatpush.bf16.msrb.mxu1 %v2546_v18  ;;  %v33_v62 = vld [vmem:[%s4715_s0 + $0x18] sm:$0xff]  ;;  %v40_v63 = vld [vmem:[%s4715_s0 + $0x50] sm:$0xff]  ;;  %v2800_v7 = vld [vmem:[%s4716_s1 + $0x284] sm:$0xf0] }
  0x32   :  { %918 = vmatpush.bf16.msrb.mxu2 %v2346_v21  ;;  %v59_v21 = vld [vmem:[%s4715_s0 + $0xe8] sm:$0xff]  ;;  %v3370_v11 = vpack.c.bf16 %v40_v63, %v33_v62  ;;  %v93_v14 = vld [vmem:[%s4715_s0 + $0x1f8] sm:$0xff]  ;;  %v46_v16 = vld [vmem:[%s4715_s0 + $0x80] sm:$0xff] }
  0x33   :  { %967 = vmatpush.bf16.msrb.mxu3 %v2410_v22  ;;  %v66_v22 = vld [vmem:[%s4715_s0 + $0x120] sm:$0xff]  ;;  %1016 = vmatpush.bf16.msrb.mxu0 %v2474_v25  ;;  %v87_v15 = vld [vmem:[%s4715_s0 + $0x1c8] sm:$0xff]  ;;  %v53_v17 = vld [vmem:[%s4715_s0 + $0xb8] sm:$0xff] }
  0x34   :  { %v3284_v30 = vpack.c.bf16 %v66_v22, %v59_v21  ;;  %v94_v18 = vld [vmem:[%s4715_s0 + $0x200] sm:$0xff]  ;;  %v47_v19 = vld [vmem:[%s4715_s0 + $0x88] sm:$0xff]  ;;  %v3402_v22 = vpack.c.bf16 %v53_v17, %v46_v16  ;;  %v60_v25 = vld [vmem:[%s4715_s0 + $0xf0] sm:$0xff] }
  0x35   :  { %830 = vmatmul.bf16.gmra.mxu0 %v3163_v36  ;;  %855 = vmatmul.bf16.gmra.mxu2 %v3165_v37  ;;  %v54_v20 = vld [vmem:[%s4715_s0 + $0xc0] sm:$0xff]  ;;  %v3404_v23 = vpack.c.bf16 %v94_v18, %v87_v15  ;;  %v67_v26 = vld [vmem:[%s4715_s0 + $0x128] sm:$0xff]  ;;  %v68_v38 = vld [vmem:[%s4715_s0 + $0x130] sm:$0xff] }
  0x36   :  { %919 = vmatpush.bf16.msrb.mxu2 %v2338_v33  ;;  %879 = vmatmul.bf16.gmra.mxu1 %v3176_v41  ;;  %v2465_v33 = vld [vmem:[%s4716_s1 + $0x230] sm:$0xf]  ;;  %v3406_v24 = vpack.c.bf16 %v54_v20, %v47_v19  ;;  %v34_v27 = vld [vmem:[%s4715_s0 + $0x20] sm:$0xff]  ;;  %v3436_v39 = vpack.c.bf16 %v67_v26, %v60_v25  ;;  %v55_v48 = vld [vmem:[%s4715_s0 + $0xc8] sm:$0xff] }
  0x37   :  { %968 = vmatpush.bf16.msrb.mxu3 %v2402_v34  ;;  %v2790_v34 = vld [vmem:[%s4716_s1 + $0x234] sm:$0xf0]  ;;  %1065 = vmatpush.bf16.msrb.mxu1 %v2538_v32  ;;  %v82_v52 = vld [vmem:[%s4715_s0 + $0x1a0] sm:$0xff]  ;;  %v88_v57 = vld [vmem:[%s4715_s0 + $0x1d0] sm:$0xff] }
  0x38   :  { %904 = vmatmul.bf16.gmra.mxu3 %v3178_v42  ;;  %v2466_v35 = vor.u32 %v2790_v34, %v2465_v33  ;;  %v41_v32 = vld [vmem:[%s4715_s0 + $0x58] sm:$0xff]  ;;  %v35_v33 = vld [vmem:[%s4715_s0 + $0x28] sm:$0xff]  ;;  %v42_v34 = vld [vmem:[%s4715_s0 + $0x60] sm:$0xff] }
  0x39   :  { %v49_v49 = vld [vmem:[%s4715_s0 + $0x98] sm:$0xff]  ;;  %v2733_v62 = vld [vmem:[%s4716_s1 + $0x74] sm:$0xf] }
  0x3a   :  { %920 = vmatpush.bf16.msrb.mxu2 %v2330_v45  ;;  %1017 = vmatpush.bf16.msrb.mxu0 %v2466_v35  ;;  %v2458_v45 = vor.u32 %v2788_v43, %v2457_v40  ;;  %v61_v35 = vld [vmem:[%s4715_s0 + $0xf8] sm:$0xff]  ;;  %v3438_v40 = vpack.c.bf16 %v41_v32, %v34_v27  ;;  %v3440_v43 = vpack.c.bf16 %v42_v34, %v35_v33  ;;  %v2749_v19 = vld [vmem:[%s4716_s1 + $0xf4] sm:$0xf]  ;;  %v2731_v33 = vld [vmem:[%s4716_s1 + $0x64] sm:$0xf] }
  0x3b   :  { %969 = vmatpush.bf16.msrb.mxu3 %v2394_v46  ;;  %v2521_v46 = vld [vmem:[%s4716_s1 + $0x2a0] sm:$0xf]  ;;  %1066 = vmatpush.bf16.msrb.mxu1 %v2530_v44  ;;  %v3442_v44 = vpack.c.bf16 %v68_v38, %v61_v35  ;;  %v69_v63 = vld [vmem:[%s4715_s0 + $0x138] sm:$0xff]  ;;  %v2765_v26 = vld [vmem:[%s4716_s1 + $0x174] sm:$0xf] }
  0x3c   :  { %v2522_v50 = vor.u32 %v2804_v47, %v2521_v46  ;;  %v81_v46 = vld [vmem:[%s4715_s0 + $0x198] sm:$0xff]  ;;  %v48_v47 = vld [vmem:[%s4715_s0 + $0x90] sm:$0xff]  ;;  %v2235_v34 = vld [vmem:[%s4716_s1 + $0x68] sm:$0xf0] }
  0x3d   :  { %v3474_v54 = vpack.c.bf16 %v55_v48, %v48_v47  ;;  %v2307_v20 = vld [vmem:[%s4716_s1 + $0xf8] sm:$0xf0]  ;;  %v2238_v35 = vor.u32 %v2731_v33, %v2235_v34  ;;  %v296_v38 = vld [vmem:[%s4717_s2] sm:$0x3]  ;;  %v76_v47 = vld [vmem:[%s4715_s0 + $0x170] sm:$0xff] }
  0x3e   :  { %921 = vmatpush.bf16.msrb.mxu2 %v2322_v60  ;;  %1018 = vmatpush.bf16.msrb.mxu0 %v2458_v45  ;;  %v39_v60 = vld [vmem:[%s4715_s0 + $0x48] sm:$0xff]  ;;  %v74_v45 = vld [vmem:[%s4715_s0 + $0x160] sm:$0xff]  ;;  %v2310_v25 = vor.u32 %v2749_v19, %v2307_v20  ;;  %v2371_v27 = vld [vmem:[%s4716_s1 + $0x178] sm:$0xf0] }
  0x3f   :  { %970 = vmatpush.bf16.msrb.mxu3 %v2386_v61  ;;  %v80_v61 = vld [vmem:[%s4715_s0 + $0x190] sm:$0xff]  ;;  %1067 = vmatpush.bf16.msrb.mxu1 %v2522_v50  ;;  %v3366_v9 = vpack.c.bf16 %v39_v60, %v32_v59  ;;  %v3472_v53 = vpack.c.bf16 %v81_v46, %v74_v45  ;;  %v62_v59 = vld [vmem:[%s4715_s0 + $0x100] sm:$0xff]  ;;  %v2374_v32 = vor.u32 %v2765_v26, %v2371_v27  ;;  %v109_v46 = vld [vmem:[%s4715_s0 + $0x278] sm:$0xff] }
  0x40   :  { %v3368_v10 = vpack.c.bf16 %v80_v61, %v73_v58  ;;  %v56_v50 = vld [vmem:[%s4715_s0 + $0xd0] sm:$0xff]  ;;  %v95_v58 = vld [vmem:[%s4715_s0 + $0x208] sm:$0xff]  ;;  %v2569_v60 = vld [vmem:[%s4716_s1 + $0x300] sm:$0xf]  ;;  %v3522_v16 = vpack.c.bf16 %v69_v63, %v62_v59 }
  0x41   :  { %v3476_v55 = vpack.c.bf16 %v56_v50, %v49_v49  ;;  %v2816_v61 = vld [vmem:[%s4716_s1 + $0x304] sm:$0xf0]  ;;  %v3520_v15 = vpack.c.bf16 %v95_v58, %v88_v57  ;;  %v102_v45 = vld [vmem:[%s4715_s0 + $0x240] sm:$0xff]  ;;  %v77_v49 = vld [vmem:[%s4715_s0 + $0x178] sm:$0xff] }
  0x42   :  { %922 = vmatpush.bf16.msrb.mxu2 %v2314_v12  ;;  %1019 = vmatpush.bf16.msrb.mxu0 %v2450_v51  ;;  %v2506_v12 = vor.u32 %v2800_v7, %v2505_v4  ;;  %v75_v51 = vld [vmem:[%s4715_s0 + $0x168] sm:$0xff]  ;;  %v2243_v4 = vld [vmem:[%s4716_s1 + $0x78] sm:$0xf0]  ;;  %v70_v7 = vld [vmem:[%s4715_s0 + $0x140] sm:$0xff]  ;;  %4739 = vst [vmem:[#allocation8_spill] sm:$0xff] %v3522_v16 }
  0x43   :  { %971 = vmatpush.bf16.msrb.mxu3 %v2378_v13  ;;  %1068 = vmatpush.bf16.msrb.mxu1 %v2514_v2  ;;  %v86_v13 = vld [vmem:[%s4715_s0 + $0x1c0] sm:$0xff]  ;;  %4737 = vst [vmem:[#allocation6_spill] sm:$0xff] %v3476_v55  ;;  %v3478_v56 = vpack.c.bf16 %v82_v52, %v75_v51  ;;  %v63_v2 = vld [vmem:[%s4715_s0 + $0x108] sm:$0xff]  ;;  %v2729_v50 = vld [vmem:[%s4716_s1 + $0x54] sm:$0xf]  ;;  %v3574_v52 = vperm.slane %v296_v38, 0 }
  0x44   :  { %v3400_v21 = vpack.c.bf16 %v93_v14, %v86_v13  ;;  %v96_v13 = vld [vmem:[%s4715_s0 + $0x210] sm:$0xff]  ;;  %v2246_v14 = vor.u32 %v2733_v62, %v2243_v4  ;;  %v3524_v17 = vpack.c.bf16 %v70_v7, %v63_v2  ;;  %v83_v48 = vld [vmem:[%s4715_s0 + $0x1a8] sm:$0xff]  ;;  %v2227_v51 = vld [vmem:[%s4716_s1 + $0x58] sm:$0xf0] }
  0x45   :  { %835 = vmatmul.bf16.gmra.mxu0 %v3280_v28  ;;  %860 = vmatmul.bf16.gmra.mxu2 %v3282_v29  ;;  %4738 = vst [vmem:[#allocation7_spill] sm:$0xff] %v3478_v56  ;;  %v84_v57 = vld [vmem:[%s4715_s0 + $0x1b0] sm:$0xff]  ;;  %v103_v58 = vld [vmem:[%s4715_s0 + $0x248] sm:$0xff]  ;;  %v110_v59 = vld [vmem:[%s4715_s0 + $0x280] sm:$0xff]  ;;  %v3587_v62 = vpack.c.bf16 %v83_v48, %v76_v47 }
  0x46   :  { %884 = vmatmul.bf16.gmra.mxu1 %v3284_v30  ;;  %1020 = vmatpush.bf16.msrb.mxu0 %v2442_v3  ;;  %v2570_v3 = vor.u32 %v2816_v61, %v2569_v60  ;;  %4740 = vst [vmem:[#allocation9_spill] sm:$0xff] %v3524_v17  ;;  %v2230_v60 = vor.u32 %v2729_v50, %v2227_v51  ;;  %v2727_v4 = vld [vmem:[%s4716_s1 + $0x44] sm:$0xf]  ;;  %v2219_v7 = vld [vmem:[%s4716_s1 + $0x48] sm:$0xf0] }
  0x47   :  { %1069 = vmatpush.bf16.msrb.mxu1 %v2506_v12  ;;  %v89_v12 = vld [vmem:[%s4715_s0 + $0x1d8] sm:$0xff]  ;;  %1160 = vmatpush.bf16.msra.mxu3 %v2246_v14  ;;  %v3585_v61 = vpack.c.bf16 %v109_v46, %v102_v45  ;;  %4742 = vst [vmem:[#allocation11_spill] sm:$0xff] %v3587_v62  ;;  %v3589_v2 = vpack.c.bf16 %v84_v57, %v77_v49  ;;  %v2747_v20 = vld [vmem:[%s4716_s1 + $0xe4] sm:$0xf]  ;;  %v2725_v26 = vld [vmem:[%s4716_s1 + $0x34] sm:$0xf] }
  0x48   :  { %909 = vmatmul.bf16.gmra.mxu3 %v3286_v31  ;;  %1118 = vmatpush.bf16.msra.mxu2 %v2570_v3  ;;  %v3526_v18 = vpack.c.bf16 %v96_v13, %v89_v12  ;;  %v3591_v3 = vpack.c.bf16 %v110_v59, %v103_v58  ;;  %v2222_v14 = vor.u32 %v2727_v4, %v2219_v7  ;;  %v2763_v45 = vld [vmem:[%s4716_s1 + $0x164] sm:$0xf]  ;;  %v2363_v46 = vld [vmem:[%s4716_s1 + $0x168] sm:$0xf0] }
  0x49   :  { %4743 = vst [vmem:[#allocation12_spill] sm:$0xff] %v3589_v2  ;;  %v2366_v48 = vor.u32 %v2763_v45, %v2363_v46  ;;  %v2723_v49 = vld [vmem:[%s4716_s1 + $0x24] sm:$0xf]  ;;  %v2203_v50 = vld [vmem:[%s4716_s1 + $0x28] sm:$0xf0] }
  0x4a   :  { %4741 = vst [vmem:[#allocation10_spill] sm:$0xff] %v3526_v18  ;;  %1209 = vmatpush.bf16.msra.mxu0 %v2310_v25  ;;  %v2299_v25 = vld [vmem:[%s4716_s1 + $0xe8] sm:$0xf0]  ;;  %v2206_v59 = vor.u32 %v2723_v49, %v2203_v50  ;;  %v90_v7 = vld [vmem:[%s4715_s0 + $0x1e0] sm:$0xff] }
  0x4b   :  { %1258 = vmatpush.bf16.msra.mxu1 %v2374_v32  ;;  %1161 = vmatpush.bf16.msra.mxu3 %v2238_v35  ;;  %4744 = vst [vmem:[#allocation13_spill] sm:$0xff] %v3591_v3  ;;  %v2302_v27 = vor.u32 %v2747_v20, %v2299_v25  ;;  %v2211_v32 = vld [vmem:[%s4716_s1 + $0x38] sm:$0xf0]  ;;  %v123_v4 = vld [vmem:[%s4715_s0 + $0x2e8] sm:$0xff]  ;;  %v98_v25 = vld [vmem:[%s4715_s0 + $0x220] sm:$0xff] }
  0x4c   :  { %v2214_v34 = vor.u32 %v2725_v26, %v2211_v32  ;;  %v2195_v20 = vld [vmem:[%s4716_s1 + $0x18] sm:$0xf0]  ;;  %v2719_v49 = vld [vmem:[%s4716_s1 + $0x4] sm:$0xf]  ;;  %v2187_v50 = vld [vmem:[%s4716_s1 + $0x8] sm:$0xf0] }
  0x4d   :  { %v117_v26 = vld [vmem:[%s4715_s0 + $0x2b8] sm:$0xff] }
  0x4e   :  { %1210 = vmatpush.bf16.msra.mxu0 %v2302_v27  ;;  %v124_v27 = vld [vmem:[%s4715_s0 + $0x2f0] sm:$0xff] }
  0x4f   :  { %1162 = vmatpush.bf16.msra.mxu3 %v2230_v60  ;;  %v116_v60 = vld [vmem:[%s4715_s0 + $0x2b0] sm:$0xff]  ;;  %1259 = vmatpush.bf16.msra.mxu1 %v2366_v48  ;;  %v3673_v48 = vpack.c.bf16 %v124_v27, %v117_v26  ;;  %v2355_v27 = vld [vmem:[%s4716_s1 + $0x158] sm:$0xf0] }
  0x50   :  { %v2761_v26 = vld [vmem:[%s4716_s1 + $0x154] sm:$0xf] }
  0x51   :  { %4747 = vst [vmem:[#allocation16_spill] sm:$0xff] %v3673_v48 }
  0x53   :  { %1163 = vmatpush.bf16.msra.mxu3 %v2222_v14  ;;  %v2721_v14 = vld [vmem:[%s4716_s1 + $0x14] sm:$0xf] }
  0x54   :  { %v2198_v32 = vor.u32 %v2721_v14, %v2195_v20 }
  0x55   :  { %840 = vmatmul.bf16.gmra.mxu0 %v3364_v8  ;;  %923 = vmatmul.bf16.vlgmr.msrb.gmra.mxu2 %v3366_v9 }
  0x56   :  { %889 = vmatmul.bf16.gmra.mxu1 %v3368_v10 }
  0x57   :  { %1164 = vmatpush.bf16.msra.mxu3 %v2214_v34 }
  0x58   :  { %972 = vmatmul.bf16.vlgmr.msrb.gmra.mxu3 %v3370_v11 }
  0x5b   :  { %1165 = vmatpush.bf16.msra.mxu3 %v2206_v59 }
  0x5f   :  { %1166 = vmatpush.bf16.msra.mxu3 %v2198_v32 }
  0x65   :  { %845 = vmatmul.bf16.gmra.mxu0 %v3400_v21  ;;  %928 = vmatmul.bf16.gmra.mxu2 %v3402_v22 }
  0x66   :  { %894 = vmatmul.bf16.gmra.mxu1 %v3404_v23 }
  0x68   :  { %977 = vmatmul.bf16.gmra.mxu3 %v3406_v24 }
  0x75   :  { %933 = vmatmul.bf16.gmra.mxu2 %v3436_v39  ;;  %1021 = vmatmul.bf16.vlgmr.msrb.gmra.mxu0 %v3438_v40 }
  0x76   :  { %1070 = vmatmul.bf16.vlgmr.msrb.gmra.mxu1 %v3440_v43 }
  0x78   :  { %982 = vmatmul.bf16.gmra.mxu3 %v3442_v44 }
  0x85   :  { %938 = vmatmul.bf16.gmra.mxu2 %v3472_v53  ;;  %1026 = vmatmul.bf16.gmra.mxu0 %v3474_v54 }
  0x86   :  { %1075 = vmatmul.bf16.gmra.mxu1 %v3476_v55 }
  0x88   :  { %987 = vmatmul.bf16.gmra.mxu3 %v3478_v56 }
  0x95   :  { %943 = vmatmul.bf16.gmra.mxu2 %v3520_v15  ;;  %1031 = vmatmul.bf16.gmra.mxu0 %v3522_v16 }
  0x96   :  { %1080 = vmatmul.bf16.gmra.mxu1 %v3524_v17 }
  0x98   :  { %992 = vmatmul.bf16.gmra.mxu3 %v3526_v18 }
  0xa2   :  { %v826_v63 = vpop.f32.mrf.mxu0 }
  0xa3   :  { %v827_v12 = vadd.f32 %v826_v63, %v3574_v52  ;;  %v875_v13 = vpop.f32.mrf.mxu1 }
  0xa5   :  { %v3600_v19 = vadd.f32 %v875_v13, %v827_v12  ;;  %948 = vmatmul.bf16.gmra.mxu2 %v3585_v61  ;;  %1036 = vmatmul.bf16.gmra.mxu0 %v3587_v62  ;;  %v97_v12 = vld [vmem:[%s4715_s0 + $0x218] sm:$0xff]  ;;  %v91_v13 = vld [vmem:[%s4715_s0 + $0x1e8] sm:$0xff] }
  0xa6   :  { %1085 = vmatmul.bf16.gmra.mxu1 %v3589_v2  ;;  %v3669_v45 = vpack.c.bf16 %v97_v12, %v90_v7  ;;  %v2745_v7 = vld [vmem:[%s4716_s1 + $0xd4] sm:$0xf]  ;;  %v2291_v12 = vld [vmem:[%s4716_s1 + $0xd8] sm:$0xf0] }
  0xa8   :  { %997 = vmatmul.bf16.gmra.mxu3 %v3591_v3  ;;  %v851_v33 = vpop.f32.mrf.mxu2  ;;  %4745 = vst [vmem:[#allocation14_spill] sm:$0xff] %v3669_v45 }
  0xa9   :  { %v852_v35 = vadd.f32 %v851_v33, %v3574_v52 }
  0xaa   :  { %v828_v47 = vpop.f32.mrf.mxu0 }
  0xab   :  { %v900_v38 = vpop.f32.mrf.mxu3  ;;  %v829_v51 = vadd.f32 %v828_v47, %v3574_v52  ;;  %v877_v57 = vpop.f32.mrf.mxu1  ;;  %v3671_v47 = vpack.c.bf16 %v98_v25, %v91_v13  ;;  %v2294_v13 = vor.u32 %v2745_v7, %v2291_v12  ;;  %v105_v7 = vld [vmem:[%s4715_s0 + $0x258] sm:$0xff]  ;;  %v112_v12 = vld [vmem:[%s4715_s0 + $0x290] sm:$0xff] }
  0xac   :  { %v3632_v58 = vadd.f32 %v900_v38, %v852_v35  ;;  %v3667_v38 = vpack.c.bf16 %v123_v4, %v116_v60  ;;  %v2190_v60 = vor.u32 %v2719_v49, %v2187_v50  ;;  %v130_v50 = vld [vmem:[%s4715_s0 + $0x320] sm:$0xff]  ;;  %v3749_v3 = vpack.c.bf16 %v112_v12, %v105_v7 }
  0xad   :  { %v3637_v63 = vadd.f32 %v877_v57, %v829_v51  ;;  %4746 = vst [vmem:[#allocation15_spill] sm:$0xff] %v3671_v47  ;;  %1211 = vmatpush.bf16.msra.mxu0 %v2294_v13  ;;  %v131_v13 = vld [vmem:[%s4715_s0 + $0x328] sm:$0xff]  ;;  %v2755_v7 = vld [vmem:[%s4716_s1 + $0x124] sm:$0xf] }
  0xae   :  { %1167 = vmatpush.bf16.msra.mxu3 %v2190_v60  ;;  %v111_v60 = vld [vmem:[%s4715_s0 + $0x288] sm:$0xff]  ;;  %4749 = vst [vmem:[#allocation18_spill] sm:$0xff] %v3749_v3 }
  0xb0   :  { %v853_v33 = vpop.f32.mrf.mxu2 }
  0xb1   :  { %v854_v34 = vadd.f32 %v853_v33, %v3574_v52  ;;  %v2358_v33 = vor.u32 %v2761_v26, %v2355_v27  ;;  %v2283_v26 = vld [vmem:[%s4716_s1 + $0xc8] sm:$0xf0]  ;;  %v2759_v27 = vld [vmem:[%s4716_s1 + $0x144] sm:$0xf] }
  0xb2   :  { %v831_v46 = vpop.f32.mrf.mxu0 }
  0xb3   :  { %v902_v35 = vpop.f32.mrf.mxu3  ;;  %v832_v51 = vadd.f32 %v831_v46, %v3574_v52  ;;  %v880_v57 = vpop.f32.mrf.mxu1  ;;  %1260 = vmatpush.bf16.msra.mxu1 %v2358_v33 }
  0xb4   :  { %v3682_v59 = vadd.f32 %v902_v35, %v854_v34 }
  0xb5   :  { %v3684_v4 = vadd.f32 %v880_v57, %v832_v51  ;;  %953 = vmatmul.bf16.gmra.mxu2 %v3667_v38  ;;  %1041 = vmatmul.bf16.gmra.mxu0 %v3669_v45  ;;  %v137_v51 = vld [vmem:[%s4715_s0 + $0x358] sm:$0xff]  ;;  %v104_v57 = vld [vmem:[%s4715_s0 + $0x250] sm:$0xff] }
  0xb6   :  { %1090 = vmatmul.bf16.gmra.mxu1 %v3671_v47 }
  0xb8   :  { %1002 = vmatmul.bf16.gmra.mxu3 %v3673_v48  ;;  %v856_v14 = vpop.f32.mrf.mxu2  ;;  %v2347_v48 = vld [vmem:[%s4716_s1 + $0x148] sm:$0xf0] }
  0xb9   :  { %v857_v20 = vadd.f32 %v856_v14, %v3574_v52  ;;  %v138_v14 = vld [vmem:[%s4715_s0 + $0x360] sm:$0xff]  ;;  %v2350_v17 = vor.u32 %v2759_v27, %v2347_v48  ;;  %v2275_v48 = vld [vmem:[%s4716_s1 + $0xb8] sm:$0xf0] }
  0xba   :  { %v833_v32 = vpop.f32.mrf.mxu0  ;;  %v3751_v45 = vpack.c.bf16 %v138_v14, %v131_v13 }
  0xbb   :  { %v905_v25 = vpop.f32.mrf.mxu3  ;;  %v834_v34 = vadd.f32 %v833_v32, %v3574_v52  ;;  %v882_v35 = vpop.f32.mrf.mxu1  ;;  %1261 = vmatpush.bf16.msra.mxu1 %v2350_v17 }
  0xbc   :  { %v3704_v46 = vadd.f32 %v905_v25, %v857_v20  ;;  %v2743_v25 = vld [vmem:[%s4716_s1 + $0xc4] sm:$0xf]  ;;  %4750 = vst [vmem:[#allocation19_spill] sm:$0xff] %v3751_v45 }
  0xbd   :  { %v3706_v49 = vadd.f32 %v882_v35, %v834_v34  ;;  %v3742_v34 = vpack.c.bf16 %v137_v51, %v130_v50  ;;  %v3744_v35 = vpack.c.bf16 %v111_v60, %v104_v57  ;;  %v2286_v47 = vor.u32 %v2743_v25, %v2283_v26  ;;  %v2741_v51 = vld [vmem:[%s4716_s1 + $0xb4] sm:$0xf]  ;;  %v2739_v57 = vld [vmem:[%s4716_s1 + $0xa4] sm:$0xf]  ;;  %v2267_v60 = vld [vmem:[%s4716_s1 + $0xa8] sm:$0xf0] }
  0xbe   :  { %v2278_v17 = vor.u32 %v2741_v51, %v2275_v48  ;;  %v2270_v14 = vor.u32 %v2739_v57, %v2267_v60  ;;  %v2331_v25 = vld [vmem:[%s4716_s1 + $0x128] sm:$0xf0]  ;;  %v2737_v48 = vld [vmem:[%s4716_s1 + $0x94] sm:$0xf]  ;;  %v2323_v57 = vld [vmem:[%s4716_s1 + $0x118] sm:$0xf0] }
  0xbf   :  { %4748 = vst [vmem:[#allocation17_spill] sm:$0xff] %v3744_v35  ;;  %1212 = vmatpush.bf16.msra.mxu0 %v2286_v47  ;;  %v2334_v27 = vor.u32 %v2755_v7, %v2331_v25  ;;  %v125_v60 = vld [vmem:[%s4715_s0 + $0x2f8] sm:$0xff]  ;;  %v36_v7 = vld [vmem:[%s4715_s0 + $0x30] sm:$0xff]  ;;  %v126_v25 = vld [vmem:[%s4715_s0 + $0x300] sm:$0xff] }
  0xc0   :  { %v858_v20 = vpop.f32.mrf.mxu2 }
  0xc1   :  { %v859_v32 = vadd.f32 %v858_v20, %v3574_v52 }
  0xc2   :  { %v836_v2 = vpop.f32.mrf.mxu0 }
  0xc3   :  { %v907_v33 = vpop.f32.mrf.mxu3  ;;  %v837_v18 = vadd.f32 %v836_v2, %v3574_v52  ;;  %v885_v62 = vpop.f32.mrf.mxu1  ;;  %v2757_v2 = vld [vmem:[%s4716_s1 + $0x134] sm:$0xf]  ;;  %1213 = vmatpush.bf16.msra.mxu0 %v2278_v17 }
  0xc4   :  { %v3754_v20 = vadd.f32 %v907_v33, %v859_v32  ;;  %v2753_v17 = vld [vmem:[%s4716_s1 + $0x114] sm:$0xf] }
  0xc5   :  { %v3756_v50 = vadd.f32 %v885_v62, %v837_v18  ;;  %958 = vmatmul.bf16.gmra.mxu2 %v3742_v34  ;;  %1046 = vmatmul.bf16.gmra.mxu0 %v3744_v35  ;;  %v2339_v18 = vld [vmem:[%s4716_s1 + $0x138] sm:$0xf0] }
  0xc6   :  { %1095 = vmatmul.bf16.gmra.mxu1 %v3749_v3  ;;  %v2342_v62 = vor.u32 %v2757_v2, %v2339_v18  ;;  %v2259_v2 = vld [vmem:[%s4716_s1 + $0x98] sm:$0xf0]  ;;  %v2315_v3 = vld [vmem:[%s4716_s1 + $0x108] sm:$0xf0] }
  0xc7   :  { %1214 = vmatpush.bf16.msra.mxu0 %v2270_v14  ;;  %v119_v14 = vld [vmem:[%s4715_s0 + $0x2c8] sm:$0xff] }
  0xc8   :  { %1007 = vmatmul.bf16.gmra.mxu3 %v3751_v45  ;;  %v861_v47 = vpop.f32.mrf.mxu2  ;;  %1262 = vmatpush.bf16.msra.mxu1 %v2342_v62  ;;  %v118_v62 = vld [vmem:[%s4715_s0 + $0x2c0] sm:$0xff]  ;;  %v3839_v35 = vpack.c.bf16 %v126_v25, %v119_v14  ;;  %v132_v14 = vld [vmem:[%s4715_s0 + $0x330] sm:$0xff]  ;;  %v57_v25 = vld [vmem:[%s4715_s0 + $0xd8] sm:$0xff] }
  0xc9   :  { %v862_v12 = vadd.f32 %v861_v47, %v3574_v52  ;;  %v2262_v47 = vor.u32 %v2737_v48, %v2259_v2 }
  0xca   :  { %v838_v26 = vpop.f32.mrf.mxu0 }
  0xcb   :  { %v910_v13 = vpop.f32.mrf.mxu3  ;;  %v839_v32 = vadd.f32 %v838_v26, %v3574_v52  ;;  %v887_v33 = vpop.f32.mrf.mxu1  ;;  %1215 = vmatpush.bf16.msra.mxu0 %v2262_v47 }
  0xcc   :  { %v3788_v51 = vadd.f32 %v910_v13, %v862_v12  ;;  %1263 = vmatpush.bf16.msra.mxu1 %v2334_v27  ;;  %v43_v12 = vld [vmem:[%s4715_s0 + $0x68] sm:$0xff]  ;;  %v2326_v13 = vor.u32 %v2753_v17, %v2323_v57  ;;  %v2735_v27 = vld [vmem:[%s4716_s1 + $0x84] sm:$0xf]  ;;  %v3832_v17 = vpack.c.bf16 %v125_v60, %v118_v62 }
  0xcd   :  { %v3799_v18 = vadd.f32 %v887_v33, %v839_v32  ;;  %v2251_v32 = vld [vmem:[%s4716_s1 + $0x88] sm:$0xf0]  ;;  %v2751_v33 = vld [vmem:[%s4716_s1 + $0x104] sm:$0xf]  ;;  %v3834_v57 = vpack.c.bf16 %v43_v12, %v36_v7 }
  0xce   :  { %v2254_v47 = vor.u32 %v2735_v27, %v2251_v32  ;;  %v133_v27 = vld [vmem:[%s4715_s0 + $0x338] sm:$0xff]  ;;  %v140_v32 = vld [vmem:[%s4715_s0 + $0x370] sm:$0xff] }
  0xd0   :  { %v863_v26 = vpop.f32.mrf.mxu2  ;;  %1264 = vmatpush.bf16.msra.mxu1 %v2326_v13  ;;  %1216 = vmatpush.bf16.msra.mxu0 %v2254_v47 }
  0xd1   :  { %v864_v48 = vadd.f32 %v863_v26, %v3574_v52  ;;  %v2318_v26 = vor.u32 %v2751_v33, %v2315_v3 }
  0xd2   :  { %v841_v45 = vpop.f32.mrf.mxu0 }
  0xd3   :  { %v912_v2 = vpop.f32.mrf.mxu3  ;;  %v842_v55 = vadd.f32 %v841_v45, %v3574_v52  ;;  %v890_v56 = vpop.f32.mrf.mxu1 }
  0xd4   :  { %v3842_v16 = vadd.f32 %v912_v2, %v864_v48  ;;  %1265 = vmatpush.bf16.msra.mxu1 %v2318_v26 }
  0xd5   :  { %v3844_v62 = vadd.f32 %v890_v56, %v842_v55  ;;  %1051 = vmatmul.bf16.gmra.mxu0 %v3832_v17  ;;  %2575 = vmatmul.msk.bf16.vlgmr.msra.gmra.mxu2 %vm792_vm0, %v3834_v57 }
  0xd6   :  { %1100 = vmatmul.bf16.gmra.mxu1 %v3839_v35 }
  0xd8   :  { %1168 = vmatmul.bf16.vlgmr.msra.gmra.mxu3 %v3079_v0  ;;  %v924_v60 = vpop.f32.mrf.mxu2  ;;  %v139_v0 = vld [vmem:[%s4715_s0 + $0x368] sm:$0xff] }
  0xd9   :  { %v925_v45 = vadd.f32 %v924_v60, %v3600_v19  ;;  %v50_v19 = vld [vmem:[%s4715_s0 + $0xa0] sm:$0xff]  ;;  %v3874_v47 = vpack.c.bf16 %v139_v0, %v132_v14 }
  0xda   :  { %v843_v12 = vpop.f32.mrf.mxu0  ;;  %v3876_v26 = vpack.c.bf16 %v57_v25, %v50_v19 }
  0xdb   :  { %v973_v7 = vpop.f32.mrf.mxu3  ;;  %v844_v3 = vadd.f32 %v843_v12, %v3574_v52  ;;  %v892_v13 = vpop.f32.mrf.mxu1 }
  0xdc   :  { %v974_v55 = vadd.f32 %v973_v7, %v925_v45  ;;  %v3878_v45 = vpack.c.bf16 %v140_v32, %v133_v27 }
  0xdd   :  { %v3853_v56 = vadd.f32 %v892_v13, %v844_v3 }
  0xe0   :  { %v926_v33 = vpop.f32.mrf.mxu2 }
  0xe1   :  { %v927_v48 = vadd.f32 %v926_v33, %v3637_v63 }
  0xe2   :  { %v846_v60 = vpop.f32.mrf.mxu0 }
  0xe3   :  { %v975_v2 = vpop.f32.mrf.mxu3  ;;  %v847_v7 = vadd.f32 %v846_v60, %v3574_v52  ;;  %v895_v12 = vpop.f32.mrf.mxu1 }
  0xe4   :  { %v976_v3 = vadd.f32 %v975_v2, %v927_v48  ;;  %v64_v48 = vld [vmem:[%s4715_s0 + $0x110] sm:$0xff]  ;;  %v71_v2 = vld [vmem:[%s4715_s0 + $0x148] sm:$0xff] }
  0xe5   :  { %v3881_v13 = vadd.f32 %v895_v12, %v847_v7  ;;  %1056 = vmatmul.bf16.gmra.mxu0 %v3874_v47  ;;  %2576 = vmatmul.msk.bf16.gmra.mxu2 %vm792_vm0, %v3876_v26  ;;  %v3899_v7 = vpack.c.bf16 %v71_v2, %v64_v48 }
  0xe6   :  { %1105 = vmatmul.bf16.gmra.mxu1 %v3878_v45 }
  0xe8   :  { %1173 = vmatmul.bf16.gmra.mxu3 %v3163_v36  ;;  %v929_v63 = vpop.f32.mrf.mxu2 }
  0xe9   :  { %v930_v14 = vadd.f32 %v929_v63, %v3684_v4 }
  0xea   :  { %v848_v19 = vpop.f32.mrf.mxu0 }
  0xeb   :  { %v978_v0 = vpop.f32.mrf.mxu3  ;;  %v849_v25 = vadd.f32 %v848_v19, %v3574_v52  ;;  %v897_v27 = vpop.f32.mrf.mxu1 }
  0xec   :  { %v979_v32 = vadd.f32 %v978_v0, %v930_v14 }
  0xed   :  { %v3890_v33 = vadd.f32 %v897_v27, %v849_v25 }
  0xf0   :  { %v931_v36 = vpop.f32.mrf.mxu2 }
  0xf1   :  { %v932_v60 = vadd.f32 %v931_v36, %v3706_v49 }
  0xf2   :  { %v1022_v12 = vpop.f32.mrf.mxu0 }
  0xf3   :  { %v980_v4 = vpop.f32.mrf.mxu3  ;;  %v1023_v63 = vadd.f32 %v1022_v12, %v974_v55  ;;  %v1071_v14 = vpop.f32.mrf.mxu1 }
  0xf4   :  { %v981_v52 = vadd.f32 %v980_v4, %v932_v60  ;;  %v78_v60 = vld [vmem:[%s4715_s0 + $0x180] sm:$0xff] }
  0xf5   :  { %v3901_v0 = vadd.f32 %v1071_v14, %v1023_v63  ;;  %2577 = vmatmul.msk.bf16.gmra.mxu2 %vm792_vm0, %v3899_v7  ;;  %1217 = vmatmul.bf16.vlgmr.msra.gmra.mxu0 %v3092_v5  ;;  %v85_v5 = vld [vmem:[%s4715_s0 + $0x1b8] sm:$0xff] }
  0xf6   :  { %1266 = vmatmul.bf16.vlgmr.msra.gmra.mxu1 %v3366_v9 }
  0xf8   :  { %1178 = vmatmul.bf16.gmra.mxu3 %v3280_v28  ;;  %v934_v19 = vpop.f32.mrf.mxu2 }
  0xf9   :  { %v935_v49 = vadd.f32 %v934_v19, %v3756_v50  ;;  %v3918_v50 = vpack.c.bf16 %v85_v5, %v78_v60  ;;  %v2781_v5 = vld [vmem:[%s4716_s1 + $0x1f4] sm:$0xf] }
  0xfa   :  { %v1024_v27 = vpop.f32.mrf.mxu0 }
  0xfb   :  { %v983_v25 = vpop.f32.mrf.mxu3  ;;  %v1025_v2 = vadd.f32 %v1024_v27, %v976_v3  ;;  %v1073_v55 = vpop.f32.mrf.mxu1 }
  0xfc   :  { %v984_v48 = vadd.f32 %v983_v25, %v935_v49 }
  0xfd   :  { %v3909_v36 = vadd.f32 %v1073_v55, %v1025_v2 }
 0x100   :  { %v936_v9 = vpop.f32.mrf.mxu2 }
 0x101   :  { %v937_v28 = vadd.f32 %v936_v9, %v3799_v18  ;;  %v2499_v9 = vld [vmem:[%s4716_s1 + $0x278] sm:$0xf0] }
 0x102   :  { %v1027_v12 = vpop.f32.mrf.mxu0 }
 0x103   :  { %v985_v4 = vpop.f32.mrf.mxu3  ;;  %v1028_v3 = vadd.f32 %v1027_v12, %v979_v32  ;;  %v1076_v14 = vpop.f32.mrf.mxu1 }
 0x104   :  { %v986_v63 = vadd.f32 %v985_v4, %v937_v28 }
 0x105   :  { %v3920_v19 = vadd.f32 %v1076_v14, %v1028_v3  ;;  %2578 = vmatmul.msk.bf16.gmra.mxu2 %vm792_vm0, %v3918_v50  ;;  %1222 = vmatmul.bf16.gmra.mxu0 %v3176_v41  ;;  %v2435_v41 = vld [vmem:[%s4716_s1 + $0x1f8] sm:$0xf0] }
 0x106   :  { %1271 = vmatmul.bf16.gmra.mxu1 %v3402_v22  ;;  %v92_v22 = vld [vmem:[%s4715_s0 + $0x1f0] sm:$0xff] }
 0x108   :  { %1183 = vmatmul.bf16.gmra.mxu3 %v3364_v8  ;;  %v939_v49 = vpop.f32.mrf.mxu2  ;;  %v2797_v8 = vld [vmem:[%s4716_s1 + $0x274] sm:$0xf] }
 0x109   :  { %v940_v18 = vadd.f32 %v939_v49, %v3844_v62  ;;  %v99_v62 = vld [vmem:[%s4715_s0 + $0x228] sm:$0xff]  ;;  %v2502_v28 = vor.u32 %v2797_v8, %v2499_v9  ;;  %v2815_v8 = vld [vmem:[%s4716_s1 + $0x304] sm:$0xf] }
 0x10a   :  { %v1029_v27 = vpop.f32.mrf.mxu0  ;;  %v3951_v14 = vpack.c.bf16 %v99_v62, %v92_v22  ;;  %v2571_v22 = vld [vmem:[%s4716_s1 + $0x308] sm:$0xf0] }
 0x10b   :  { %v988_v25 = vpop.f32.mrf.mxu3  ;;  %v1030_v32 = vadd.f32 %v1029_v27, %v981_v52  ;;  %v1078_v55 = vpop.f32.mrf.mxu1  ;;  %v2438_v52 = vor.u32 %v2781_v5, %v2435_v41  ;;  %1356 = vmatpush.bf16.msrb.mxu3 %v2502_v28  ;;  %v2779_v41 = vld [vmem:[%s4716_s1 + $0x1e4] sm:$0xf]  ;;  %v2574_v9 = vor.u32 %v2815_v8, %v2571_v22  ;;  %v2411_v8 = vld [vmem:[%s4716_s1 + $0x1c8] sm:$0xf0] }
 0x10c   :  { %v3928_v2 = vadd.f32 %v988_v25, %v940_v18  ;;  %v2795_v28 = vld [vmem:[%s4716_s1 + $0x264] sm:$0xf] }
 0x10d   :  { %v3930_v60 = vadd.f32 %v1078_v55, %v1030_v32  ;;  %1307 = vmatpush.bf16.msrb.mxu2 %v2438_v52  ;;  %1461 = vmatpush.bf16.msrb.mxu1 %v2574_v9 }
 0x110   :  { %v941_v4 = vpop.f32.mrf.mxu2 }
 0x111   :  { %v942_v12 = vadd.f32 %v941_v4, %v3853_v56  ;;  %v2813_v56 = vld [vmem:[%s4716_s1 + $0x2f4] sm:$0xf] }
 0x112   :  { %v1032_v49 = vpop.f32.mrf.mxu0 }
 0x113   :  { %v990_v3 = vpop.f32.mrf.mxu3  ;;  %v1033_v25 = vadd.f32 %v1032_v49, %v984_v48  ;;  %v1081_v27 = vpop.f32.mrf.mxu1  ;;  %v2563_v48 = vld [vmem:[%s4716_s1 + $0x2f8] sm:$0xf0] }
 0x114   :  { %v3953_v18 = vadd.f32 %v990_v3, %v942_v12  ;;  %v2566_v55 = vor.u32 %v2813_v56, %v2563_v48  ;;  %v106_v48 = vld [vmem:[%s4715_s0 + $0x260] sm:$0xff] }
 0x115   :  { %v3955_v32 = vadd.f32 %v1081_v27, %v1033_v25  ;;  %2579 = vmatmul.msk.bf16.gmra.mxu2 %vm792_vm0, %v3951_v14  ;;  %1227 = vmatmul.bf16.gmra.mxu0 %v3284_v30  ;;  %v2427_v30 = vld [vmem:[%s4716_s1 + $0x1e8] sm:$0xf0]  ;;  %v2777_v25 = vld [vmem:[%s4716_s1 + $0x1d4] sm:$0xf]  ;;  %v2419_v27 = vld [vmem:[%s4716_s1 + $0x1d8] sm:$0xf0] }
 0x116   :  { %1276 = vmatmul.bf16.gmra.mxu1 %v3436_v39  ;;  %1405 = vmatpush.bf16.msrb.mxu0 %v2566_v55  ;;  %v2430_v62 = vor.u32 %v2779_v41, %v2427_v30  ;;  %v113_v55 = vld [vmem:[%s4715_s0 + $0x298] sm:$0xff] }
 0x117   :  { %v2483_v41 = vld [vmem:[%s4716_s1 + $0x258] sm:$0xf0] }
 0x118   :  { %1188 = vmatmul.bf16.gmra.mxu3 %v3400_v21  ;;  %v944_v5 = vpop.f32.mrf.mxu2  ;;  %1308 = vmatpush.bf16.msrb.mxu2 %v2430_v62 }
 0x119   :  { %v945_v21 = vadd.f32 %v944_v5, %v3881_v13  ;;  %v2491_v13 = vld [vmem:[%s4716_s1 + $0x268] sm:$0xf0]  ;;  %v2793_v5 = vld [vmem:[%s4716_s1 + $0x254] sm:$0xf] }
 0x11a   :  { %v1034_v52 = vpop.f32.mrf.mxu0  ;;  %v2494_v49 = vor.u32 %v2795_v28, %v2491_v13  ;;  %v2486_v30 = vor.u32 %v2793_v5, %v2483_v41  ;;  %v2791_v13 = vld [vmem:[%s4716_s1 + $0x244] sm:$0xf]  ;;  %v2555_v5 = vld [vmem:[%s4716_s1 + $0x2e8] sm:$0xf0]  ;;  %v2789_v41 = vld [vmem:[%s4716_s1 + $0x234] sm:$0xf] }
 0x11b   :  { %v993_v39 = vpop.f32.mrf.mxu3  ;;  %v1035_v12 = vadd.f32 %v1034_v52, %v986_v63  ;;  %v1083_v3 = vpop.f32.mrf.mxu1  ;;  %v2422_v63 = vor.u32 %v2777_v25, %v2419_v27  ;;  %v4016_v52 = vpack.c.bf16 %v113_v55, %v106_v48  ;;  %v2773_v27 = vld [vmem:[%s4716_s1 + $0x1b4] sm:$0xf]  ;;  %v2403_v48 = vld [vmem:[%s4716_s1 + $0x1b8] sm:$0xf0] }
 0x11c   :  { %v3987_v4 = vadd.f32 %v993_v39, %v945_v21  ;;  %1357 = vmatpush.bf16.msrb.mxu3 %v2494_v49  ;;  %v2775_v39 = vld [vmem:[%s4716_s1 + $0x1c4] sm:$0xf]  ;;  %v2406_v55 = vor.u32 %v2773_v27, %v2403_v48  ;;  %v2387_v27 = vld [vmem:[%s4716_s1 + $0x198] sm:$0xf0] }
 0x11d   :  { %v3995_v56 = vadd.f32 %v1083_v3, %v1035_v12  ;;  %1309 = vmatpush.bf16.msrb.mxu2 %v2422_v63  ;;  %v2414_v9 = vor.u32 %v2775_v39, %v2411_v8  ;;  %v2475_v12 = vld [vmem:[%s4716_s1 + $0x248] sm:$0xf0] }
 0x11e   :  { %v2395_v39 = vld [vmem:[%s4716_s1 + $0x1a8] sm:$0xf0] }
 0x120   :  { %v946_v21 = vpop.f32.mrf.mxu2  ;;  %1358 = vmatpush.bf16.msrb.mxu3 %v2486_v30 }
 0x121   :  { %v947_v22 = vadd.f32 %v946_v21, %v3890_v33  ;;  %1310 = vmatpush.bf16.msrb.mxu2 %v2414_v9  ;;  %v2478_v33 = vor.u32 %v2791_v13, %v2475_v12  ;;  %v2771_v21 = vld [vmem:[%s4716_s1 + $0x1a4] sm:$0xf]  ;;  %v2459_v13 = vld [vmem:[%s4716_s1 + $0x228] sm:$0xf0] }
 0x122   :  { %v1037_v28 = vpop.f32.mrf.mxu0 }
 0x123   :  { %v995_v62 = vpop.f32.mrf.mxu3  ;;  %v1038_v49 = vadd.f32 %v1037_v28, %v3928_v2  ;;  %v1086_v25 = vpop.f32.mrf.mxu1  ;;  %v2811_v2 = vld [vmem:[%s4716_s1 + $0x2e4] sm:$0xf] }
 0x124   :  { %v4024_v3 = vadd.f32 %v995_v62, %v947_v22  ;;  %1359 = vmatpush.bf16.msrb.mxu3 %v2478_v33  ;;  %v2398_v62 = vor.u32 %v2771_v21, %v2395_v39  ;;  %v2787_v28 = vld [vmem:[%s4716_s1 + $0x224] sm:$0xf] }
 0x125   :  { %v4033_v63 = vadd.f32 %v1086_v25, %v1038_v49  ;;  %2580 = vmatmul.msk.bf16.gmra.mxu2 %vm792_vm0, %v4016_v52  ;;  %1232 = vmatmul.bf16.gmra.mxu0 %v3368_v10  ;;  %v2558_v10 = vor.u32 %v2811_v2, %v2555_v5  ;;  %v2462_v33 = vor.u32 %v2787_v28, %v2459_v13  ;;  %v2785_v5 = vld [vmem:[%s4716_s1 + $0x214] sm:$0xf]  ;;  %v2443_v28 = vld [vmem:[%s4716_s1 + $0x208] sm:$0xf0] }
 0x126   :  { %1281 = vmatmul.bf16.gmra.mxu1 %v3472_v53  ;;  %1311 = vmatpush.bf16.msrb.mxu2 %v2406_v55  ;;  %v2467_v53 = vld [vmem:[%s4716_s1 + $0x238] sm:$0xf0]  ;;  %v120_v55 = vld [vmem:[%s4715_s0 + $0x2d0] sm:$0xff] }
 0x127   :  { %v2470_v30 = vor.u32 %v2789_v41, %v2467_v53  ;;  %1406 = vmatpush.bf16.msrb.mxu0 %v2558_v10  ;;  %v2451_v41 = vld [vmem:[%s4716_s1 + $0x218] sm:$0xf0] }
 0x128   :  { %1193 = vmatmul.bf16.gmra.mxu3 %v3081_v1  ;;  %v949_v1 = vpop.f32.mrf.mxu2  ;;  %v2454_v10 = vor.u32 %v2785_v5, %v2451_v41 }
 0x129   :  { %v950_v8 = vadd.f32 %v949_v1, %v3632_v58  ;;  %1360 = vmatpush.bf16.msrb.mxu3 %v2470_v30  ;;  %v2769_v58 = vld [vmem:[%s4716_s1 + $0x194] sm:$0xf]  ;;  %v2767_v1 = vld [vmem:[%s4716_s1 + $0x184] sm:$0xf]  ;;  %v2379_v30 = vld [vmem:[%s4716_s1 + $0x188] sm:$0xf0] }
 0x12a   :  { %v1039_v9 = vpop.f32.mrf.mxu0  ;;  %1312 = vmatpush.bf16.msrb.mxu2 %v2398_v62  ;;  %v2390_v2 = vor.u32 %v2769_v58, %v2387_v27  ;;  %v2809_v58 = vld [vmem:[%s4716_s1 + $0x2d4] sm:$0xf] }
 0x12b   :  { %v998_v22 = vpop.f32.mrf.mxu3  ;;  %v1040_v49 = vadd.f32 %v1039_v9, %v3953_v18  ;;  %v1088_v25 = vpop.f32.mrf.mxu1  ;;  %v127_v18 = vld [vmem:[%s4715_s0 + $0x308] sm:$0xff]  ;;  %v2783_v9 = vld [vmem:[%s4716_s1 + $0x204] sm:$0xf] }
 0x12c   :  { %v999_v12 = vadd.f32 %v998_v22, %v950_v8  ;;  %v4093_v8 = vpack.c.bf16 %v127_v18, %v120_v55  ;;  %v2382_v22 = vor.u32 %v2767_v1, %v2379_v30 }
 0x12d   :  { %v4072_v48 = vadd.f32 %v1088_v25, %v1040_v49  ;;  %1361 = vmatpush.bf16.msrb.mxu3 %v2462_v33 }
 0x12e   :  { %1313 = vmatpush.bf16.msrb.mxu2 %v2390_v2 }
 0x130   :  { %v951_v53 = vpop.f32.mrf.mxu2 }
 0x131   :  { %v952_v21 = vadd.f32 %v951_v53, %v3682_v59  ;;  %1362 = vmatpush.bf16.msrb.mxu3 %v2454_v10  ;;  %v2446_v59 = vor.u32 %v2783_v9, %v2443_v28  ;;  %v134_v10 = vld [vmem:[%s4715_s0 + $0x340] sm:$0xff]  ;;  %v141_v53 = vld [vmem:[%s4715_s0 + $0x378] sm:$0xff] }
 0x132   :  { %v1042_v62 = vpop.f32.mrf.mxu0  ;;  %1314 = vmatpush.bf16.msrb.mxu2 %v2382_v22 }
 0x133   :  { %v1000_v39 = vpop.f32.mrf.mxu3  ;;  %v1043_v49 = vadd.f32 %v1042_v62, %v3987_v4  ;;  %v1091_v25 = vpop.f32.mrf.mxu1  ;;  %v2547_v4 = vld [vmem:[%s4716_s1 + $0x2d8] sm:$0xf0] }
 0x134   :  { %v1001_v13 = vadd.f32 %v1000_v39, %v952_v21  ;;  %v2550_v27 = vor.u32 %v2809_v58, %v2547_v4  ;;  %v4132_v39 = vpack.c.bf16 %v141_v53, %v134_v10  ;;  %v2803_v4 = vld [vmem:[%s4716_s1 + $0x2a4] sm:$0xf] }
 0x135   :  { %v4102_v33 = vadd.f32 %v1091_v25, %v1043_v49  ;;  %2581 = vmatmul.msk.bf16.gmra.mxu2 %vm792_vm0, %v4093_v8  ;;  %1237 = vmatmul.bf16.gmra.mxu0 %v3404_v23  ;;  %v2805_v25 = vld [vmem:[%s4716_s1 + $0x2b4] sm:$0xf] }
 0x136   :  { %1286 = vmatmul.bf16.gmra.mxu1 %v3520_v15  ;;  %1363 = vmatpush.bf16.msrb.mxu3 %v2446_v59  ;;  %v2531_v59 = vld [vmem:[%s4716_s1 + $0x2b8] sm:$0xf0] }
 0x137   :  { %1407 = vmatpush.bf16.msrb.mxu0 %v2550_v27  ;;  %v2523_v27 = vld [vmem:[%s4716_s1 + $0x2a8] sm:$0xf0] }
 0x138   :  { %1198 = vmatmul.bf16.gmra.mxu3 %v3165_v37  ;;  %v954_v55 = vpop.f32.mrf.mxu2 }
 0x139   :  { %v955_v2 = vadd.f32 %v954_v55, %v3704_v46  ;;  %v2807_v46 = vld [vmem:[%s4716_s1 + $0x2c4] sm:$0xf] }
 0x13a   :  { %v1044_v23 = vpop.f32.mrf.mxu0 }
 0x13b   :  { %v1003_v18 = vpop.f32.mrf.mxu3  ;;  %v1045_v15 = vadd.f32 %v1044_v23, %v4024_v3  ;;  %v1093_v37 = vpop.f32.mrf.mxu1  ;;  %v2539_v3 = vld [vmem:[%s4716_s1 + $0x2c8] sm:$0xf0] }
 0x13c   :  { %v1004_v5 = vadd.f32 %v1003_v18, %v955_v2  ;;  %v2542_v22 = vor.u32 %v2807_v46, %v2539_v3  ;;  %v2526_v18 = vor.u32 %v2803_v4, %v2523_v27 }
 0x13d   :  { %v4117_v41 = vadd.f32 %v1093_v37, %v1045_v15  ;;  %v2515_v37 = vld [vmem:[%s4716_s1 + $0x298] sm:$0xf0] }
 0x13e   :  { %1408 = vmatpush.bf16.msrb.mxu0 %v2542_v22 }
 0x140   :  { %v956_v1 = vpop.f32.mrf.mxu2 }
 0x141   :  { %v957_v30 = vadd.f32 %v956_v1, %v3754_v20  ;;  %v2534_v20 = vor.u32 %v2805_v25, %v2531_v59  ;;  %v2799_v1 = vld [vmem:[%s4716_s1 + $0x284] sm:$0xf] }
 0x142   :  { %v1047_v62 = vpop.f32.mrf.mxu0 }
 0x143   :  { %v1005_v21 = vpop.f32.mrf.mxu3  ;;  %v1048_v28 = vadd.f32 %v1047_v62, %v999_v12  ;;  %v1096_v49 = vpop.f32.mrf.mxu1  ;;  %1409 = vmatpush.bf16.msrb.mxu0 %v2534_v20 }
 0x144   :  { %v1006_v9 = vadd.f32 %v1005_v21, %v957_v30 }
 0x145   :  { %v4140_v58 = vadd.f32 %v1096_v49, %v1048_v28  ;;  %2582 = vmatmul.msk.bf16.gmra.mxu2 %vm792_vm0, %v4132_v39  ;;  %1242 = vmatmul.bf16.gmra.mxu0 %v3094_v6 }
 0x146   :  { %1291 = vmatmul.bf16.gmra.mxu1 %v3585_v61 }
 0x147   :  { %1410 = vmatpush.bf16.msrb.mxu0 %v2526_v18 }
 0x148   :  { %1203 = vmatmul.bf16.gmra.mxu3 %v3282_v29  ;;  %v959_v12 = vpop.f32.mrf.mxu2  ;;  %v2801_v29 = vld [vmem:[%s4716_s1 + $0x294] sm:$0xf] }
 0x149   :  { %v960_v55 = vadd.f32 %v959_v12, %v3788_v51  ;;  %v2518_v53 = vor.u32 %v2801_v29, %v2515_v37  ;;  %v2872_v37 = vld [vmem:[%s4717_s2] sm:$0x3] }
 0x14a   :  { %v1049_v6 = vpop.f32.mrf.mxu0 }
 0x14b   :  { %v1008_v2 = vpop.f32.mrf.mxu3  ;;  %v1050_v15 = vadd.f32 %v1049_v6, %v1001_v13  ;;  %v1098_v61 = vpop.f32.mrf.mxu1  ;;  %1411 = vmatpush.bf16.msrb.mxu0 %v2518_v53  ;;  %v2507_v13 = vld [vmem:[%s4716_s1 + $0x288] sm:$0xf0]  ;;  %v4191_v53 = vperm.slane %v2872_v37, 1  ;;  %s2174_s1 = sshll.u32 %s4722_s7, 4  ;;  %s2175_s1 = int_to_ptr.hbm [resolvable:$true] %s2174_s1 }
 0x14c   :  { %v1009_v23 = vadd.f32 %v1008_v2, %v960_v55  ;;  %v2510_v30 = vor.u32 %v2799_v1, %v2507_v13 }
 0x14d   :  { %v4160_v10 = vadd.f32 %v1098_v61, %v1050_v15 }
 0x14f   :  { %1412 = vmatpush.bf16.msrb.mxu0 %v2510_v30 }
 0x150   :  { %v961_v51 = vpop.f32.mrf.mxu2 }
 0x151   :  { %v962_v46 = vadd.f32 %v961_v51, %v3842_v16 }
 0x152   :  { %v1052_v21 = vpop.f32.mrf.mxu0 }
 0x153   :  { %v1010_v3 = vpop.f32.mrf.mxu3  ;;  %v1053_v62 = vadd.f32 %v1052_v21, %v1004_v5  ;;  %v1101_v28 = vpop.f32.mrf.mxu1 }
 0x154   :  { %v1011_v22 = vadd.f32 %v1010_v3, %v962_v46 }
 0x155   :  { %v4169_v49 = vadd.f32 %v1101_v28, %v1053_v62  ;;  %1247 = vmatmul.bf16.gmra.mxu0 %v3178_v42  ;;  %1315 = vmatmul.bf16.vlgmr.msrb.gmra.mxu2 %v3370_v11 }
 0x156   :  { %1296 = vmatmul.bf16.gmra.mxu1 %v3667_v38 }
 0x158   :  { %1364 = vmatmul.bf16.vlgmr.msrb.gmra.mxu3 %v3438_v40  ;;  %v1120_v25 = vpop.f32.mrf.mxu2 }
 0x159   :  { %v1121_v16 = vadd.f32 %v1120_v25, %v3901_v0  ;;  %v4751_v25 = vld [vmem:[#allocation8_spill] sm:$0xff] }
 0x15a   :  { %v1054_v20 = vpop.f32.mrf.mxu0 }
 0x15b   :  { %v1169_v59 = vpop.f32.mrf.mxu3  ;;  %v1055_v12 = vadd.f32 %v1054_v20, %v1006_v9  ;;  %v1103_v4 = vpop.f32.mrf.mxu1  ;;  %v1535_v55 = vmul.f32 0.2, %v1121_v16  ;;  %vm1503_vm1 = vcmp.gt.f32.partialorder %v1121_v16, 0.0 }
 0x15c   :  { %v1170_v1 = vadd.f32 %v1169_v59, %v4191_v53 }
 0x15d   :  { %v4176_v5 = vadd.f32 %v1103_v4, %v1055_v12  ;;  %v1567_v6 = vsel %vm1503_vm1, %v1121_v16, %v1535_v55 }
 0x160   :  { %v1122_v27 = vpop.f32.mrf.mxu2 }
 0x161   :  { %v1123_v2 = vadd.f32 %v1122_v27, %v3909_v36 }
 0x162   :  { %v1057_v11 = vpop.f32.mrf.mxu0 }
 0x163   :  { %v1171_v42 = vpop.f32.mrf.mxu3  ;;  %vm1505_vm2 = vcmp.gt.f32.partialorder %v1123_v2, 0.0  ;;  %v1537_v38 = vmul.f32 0.2, %v1123_v2  ;;  %v1058_v18 = vadd.f32 %v1057_v11, %v1009_v23  ;;  %v1106_v40 = vpop.f32.mrf.mxu1 }
 0x164   :  { %v1172_v59 = vadd.f32 %v1171_v42, %v4191_v53 }
 0x165   :  { %v1569_v15 = vsel %vm1505_vm2, %v1123_v2, %v1537_v38  ;;  %v4179_v0 = vadd.f32 %v1106_v40, %v1058_v18  ;;  %1252 = vmatmul.bf16.gmra.mxu0 %v3286_v31  ;;  %1320 = vmatmul.bf16.gmra.mxu2 %v3406_v24 }
 0x166   :  { %v4183_v9 = vpack.c.bf16 %v1569_v15, %v1567_v6  ;;  %1301 = vmatmul.bf16.gmra.mxu1 %v3742_v34  ;;  %v4752_v15 = vld [vmem:[#allocation7_spill] sm:$0xff] }
 0x168   :  { %1369 = vmatmul.bf16.gmra.mxu3 %v3474_v54  ;;  %v1125_v36 = vpop.f32.mrf.mxu2 }
 0x169   :  { %v1126_v61 = vadd.f32 %v1125_v36, %v3920_v19  ;;  %v4753_v36 = vld [vmem:[#allocation6_spill] sm:$0xff] }
 0x16a   :  { %v1059_v23 = vpop.f32.mrf.mxu0 }
 0x16b   :  { %v1174_v29 = vpop.f32.mrf.mxu3  ;;  %v1060_v31 = vadd.f32 %v1059_v23, %v1011_v22  ;;  %v1108_v51 = vpop.f32.mrf.mxu1  ;;  %v1539_v13 = vmul.f32 0.2, %v1126_v61  ;;  %vm1507_vm3 = vcmp.gt.f32.partialorder %v1126_v61, 0.0 }
 0x16d   :  { %v4193_v24 = vadd.f32 %v1108_v51, %v1060_v31  ;;  %v1571_v22 = vsel %vm1507_vm3, %v1126_v61, %v1539_v13 }
 0x170   :  { %v1127_v34 = vpop.f32.mrf.mxu2 }
 0x171   :  { %v1128_v54 = vadd.f32 %v1127_v34, %v3930_v60 }
 0x172   :  { %v1218_v19 = vpop.f32.mrf.mxu0 }
 0x173   :  { %v1176_v46 = vpop.f32.mrf.mxu3  ;;  %vm1509_vm4 = vcmp.gt.f32.partialorder %v1128_v54, 0.0  ;;  %v1541_v3 = vmul.f32 0.2, %v1128_v54  ;;  %v1219_v30 = vadd.f32 %v1218_v19, %v1170_v1  ;;  %v1267_v21 = vpop.f32.mrf.mxu1 }
 0x174   :  { %v1177_v31 = vadd.f32 %v1176_v46, %v4191_v53 }
 0x175   :  { %v4197_v62 = vadd.f32 %v1267_v21, %v1219_v30  ;;  %1325 = vmatmul.bf16.gmra.mxu2 %v3442_v44  ;;  %1413 = vmatmul.bf16.vlgmr.msrb.gmra.mxu0 %v3440_v43  ;;  %v1573_v28 = vsel %vm1509_vm4, %v1128_v54, %v1541_v3  ;;  %v1175_v43 = vadd.f32 %v1174_v29, %v4191_v53  ;;  %v4754_v29 = vld [vmem:[#allocation11_spill] sm:$0xff] }
 0x176   :  { %2583 = vmatmul.msk.bf16.vlgmr.msrb.gmra.mxu1 %vm792_vm0, %v3834_v57  ;;  %v4204_v60 = vpack.c.bf16 %v1573_v28, %v1571_v22 }
 0x178   :  { %1374 = vmatmul.bf16.gmra.mxu3 %v4751_v25  ;;  %v1130_v16 = vpop.f32.mrf.mxu2 }
 0x179   :  { %v1131_v20 = vadd.f32 %v1130_v16, %v3955_v32  ;;  %v2649_v16 = vld [vmem:[%s4718_s3 + $0x70] sm:$0xf] }
 0x17a   :  { %v1220_v4 = vpop.f32.mrf.mxu0 }
 0x17b   :  { %v1179_v12 = vpop.f32.mrf.mxu3  ;;  %v1221_v27 = vadd.f32 %v1220_v4, %v1172_v59  ;;  %v1269_v44 = vpop.f32.mrf.mxu1  ;;  %v1543_v11 = vmul.f32 0.2, %v1131_v20  ;;  %vm1511_vm5 = vcmp.gt.f32.partialorder %v1131_v20, 0.0  ;;  %v2832_v59 = vld [vmem:[%s4718_s3 + $0x74] sm:$0xf0]  ;;  %v4755_v4 = vld [vmem:[#allocation10_spill] sm:$0xff] }
 0x17c   :  { %v1180_v3 = vadd.f32 %v1179_v12, %v4191_v53 }
 0x17d   :  { %v4208_v55 = vadd.f32 %v1269_v44, %v1221_v27  ;;  %v1575_v61 = vsel %vm1511_vm5, %v1131_v20, %v1543_v11  ;;  %v2650_v27 = vor.u32 %v2832_v59, %v2649_v16  ;;  %v4759_v59 = vld [vmem:[#allocation12_spill] sm:$0xff] }
 0x17f   :  { %1813 = vmatpush.bf16.msra.mxu2 %v2650_v27  ;;  %v2713_v27 = vld [vmem:[%s4718_s3 + $0xf0] sm:$0xf] }
 0x180   :  { %v1132_v2 = vpop.f32.mrf.mxu2 }
 0x181   :  { %v1133_v57 = vadd.f32 %v1132_v2, %v3995_v56 }
 0x182   :  { %v1223_v18 = vpop.f32.mrf.mxu0 }
 0x183   :  { %v1181_v38 = vpop.f32.mrf.mxu3  ;;  %vm1513_vm6 = vcmp.gt.f32.partialorder %v1133_v57, 0.0  ;;  %v1545_v40 = vmul.f32 0.2, %v1133_v57  ;;  %v1224_v42 = vadd.f32 %v1223_v18, %v1175_v43  ;;  %v1272_v6 = vpop.f32.mrf.mxu1  ;;  %v4757_v43 = vld [vmem:[#allocation14_spill] sm:$0xff] }
 0x184   :  { %v2830_v18 = vld [vmem:[%s4718_s3 + $0x64] sm:$0xf0] }
 0x185   :  { %v4212_v32 = vadd.f32 %v1272_v6, %v1224_v42  ;;  %1330 = vmatmul.bf16.gmra.mxu2 %v4752_v15  ;;  %1418 = vmatmul.bf16.gmra.mxu0 %v4753_v36  ;;  %v1577_v23 = vsel %vm1513_vm6, %v1133_v57, %v1545_v40  ;;  %v2641_v57 = vld [vmem:[%s4718_s3 + $0x60] sm:$0xf]  ;;  %v1182_v40 = vadd.f32 %v1181_v38, %v4191_v53 }
 0x186   :  { %2584 = vmatmul.msk.bf16.gmra.mxu1 %vm792_vm0, %v3876_v26  ;;  %v4219_v56 = vpack.c.bf16 %v1577_v23, %v1575_v61  ;;  %v2633_v23 = vld [vmem:[%s4718_s3 + $0x50] sm:$0xf] }
 0x188   :  { %1379 = vmatmul.bf16.gmra.mxu3 %v4754_v29  ;;  %v1135_v37 = vpop.f32.mrf.mxu2  ;;  %v2828_v29 = vld [vmem:[%s4718_s3 + $0x54] sm:$0xf0] }
 0x189   :  { %v1136_v51 = vadd.f32 %v1135_v37, %v4033_v63 }
 0x18a   :  { %v1225_v34 = vpop.f32.mrf.mxu0 }
 0x18b   :  { %v1184_v1 = vpop.f32.mrf.mxu3  ;;  %v1226_v13 = vadd.f32 %v1225_v34, %v1177_v31  ;;  %v1274_v54 = vpop.f32.mrf.mxu1  ;;  %v1547_v30 = vmul.f32 0.2, %v1136_v51  ;;  %vm1515_vm7 = vcmp.gt.f32.partialorder %v1136_v51, 0.0  ;;  %v2634_v31 = vor.u32 %v2828_v29, %v2633_v23  ;;  %v2625_v34 = vld [vmem:[%s4718_s3 + $0x40] sm:$0xf] }
 0x18c   :  { %v1185_v38 = vadd.f32 %v1184_v1, %v4191_v53  ;;  %v2601_v29 = vld [vmem:[%s4718_s3 + $0x10] sm:$0xf] }
 0x18d   :  { %v4223_v19 = vadd.f32 %v1274_v54, %v1226_v13  ;;  %v1579_v20 = vsel %vm1515_vm7, %v1136_v51, %v1547_v30  ;;  %v2826_v13 = vld [vmem:[%s4718_s3 + $0x44] sm:$0xf0] }
 0x18e   :  { %v2626_v30 = vor.u32 %v2826_v13, %v2625_v34  ;;  %v2715_v13 = vld [vmem:[%s4718_s3 + $0xf8] sm:$0xf0] }
 0x190   :  { %v1137_v21 = vpop.f32.mrf.mxu2 }
 0x191   :  { %v1138_v26 = vadd.f32 %v1137_v21, %v4072_v48  ;;  %v4756_v48 = vld [vmem:[#allocation9_spill] sm:$0xff] }
 0x192   :  { %v1228_v28 = vpop.f32.mrf.mxu0 }
 0x193   :  { %v4227_v22 = vpop.f32.mrf.mxu3  ;;  %vm1517_vm8 = vcmp.gt.f32.partialorder %v1138_v26, 0.0  ;;  %v1549_v46 = vmul.f32 0.2, %v1138_v26  ;;  %v1229_v25 = vadd.f32 %v1228_v28, %v1180_v3  ;;  %v1277_v63 = vpop.f32.mrf.mxu1 }
 0x195   :  { %v4235_v12 = vadd.f32 %v1277_v63, %v1229_v25  ;;  %1335 = vmatmul.bf16.gmra.mxu2 %v4755_v4  ;;  %1423 = vmatmul.bf16.gmra.mxu0 %v4756_v48  ;;  %v1581_v44 = vsel %vm1517_vm8, %v1138_v26, %v1549_v46  ;;  %v2617_v46 = vld [vmem:[%s4718_s3 + $0x30] sm:$0xf]  ;;  %v2824_v25 = vld [vmem:[%s4718_s3 + $0x34] sm:$0xf0]  ;;  %v4760_v48 = vld [vmem:[#allocation17_spill] sm:$0xff] }
 0x196   :  { %2585 = vmatmul.msk.bf16.gmra.mxu1 %vm792_vm0, %v3899_v7  ;;  %v4242_v2 = vpack.c.bf16 %v1581_v44, %v1579_v20  ;;  %v2642_v7 = vor.u32 %v2830_v18, %v2641_v57  ;;  %v2618_v20 = vor.u32 %v2824_v25, %v2617_v46  ;;  %v2848_v44 = vld [vmem:[%s4718_s3 + $0xf4] sm:$0xf0]  ;;  %v2609_v18 = vld [vmem:[%s4718_s3 + $0x20] sm:$0xf] }
 0x198   :  { %1384 = vmatmul.bf16.gmra.mxu3 %v4757_v43  ;;  %v1140_v11 = vpop.f32.mrf.mxu2  ;;  %1814 = vmatpush.bf16.msra.mxu2 %v2642_v7 }
 0x199   :  { %v1141_v42 = vadd.f32 %v1140_v11, %v4102_v33  ;;  %v2714_v11 = vor.u32 %v2848_v44, %v2713_v27  ;;  %v4762_v27 = vld [vmem:[#allocation15_spill] sm:$0xff] }
 0x19a   :  { %v1230_v15 = vpop.f32.mrf.mxu0 }
 0x19b   :  { %v1189_v6 = vpop.f32.mrf.mxu3  ;;  %v1231_v36 = vadd.f32 %v1230_v15, %v1182_v40  ;;  %v1279_v61 = vpop.f32.mrf.mxu1  ;;  %v1551_v33 = vmul.f32 0.2, %v1141_v42  ;;  %vm1519_vm9 = vcmp.gt.f32.partialorder %v1141_v42, 0.0  ;;  %v1187_v40 = vadd.f32 %v4227_v22, %v4191_v53  ;;  %1862 = vmatpush.bf16.msra.mxu3 %v2714_v11  ;;  %v2651_v22 = vld [vmem:[%s4718_s3 + $0x78] sm:$0xf0] }
 0x19c   :  { %1815 = vmatpush.bf16.msra.mxu2 %v2634_v31  ;;  %v2820_v31 = vld [vmem:[%s4718_s3 + $0x14] sm:$0xf0] }
 0x19d   :  { %v4258_v37 = vadd.f32 %v1279_v61, %v1231_v36  ;;  %v1583_v63 = vsel %vm1519_vm9, %v1141_v42, %v1551_v33  ;;  %v2847_v33 = vld [vmem:[%s4718_s3 + $0xf4] sm:$0xf] }
 0x1a0   :  { %v1142_v51 = vpop.f32.mrf.mxu2  ;;  %1816 = vmatpush.bf16.msra.mxu2 %v2626_v30  ;;  %v2718_v30 = vor.u32 %v2847_v33, %v2715_v13 }
 0x1a1   :  { %v1143_v54 = vadd.f32 %v1142_v51, %v4117_v41  ;;  %v4758_v41 = vld [vmem:[#allocation13_spill] sm:$0xff]  ;;  %v2602_v51 = vor.u32 %v2820_v31, %v2601_v29  ;;  %v2827_v29 = vld [vmem:[%s4718_s3 + $0x54] sm:$0xf]  ;;  %v2635_v31 = vld [vmem:[%s4718_s3 + $0x58] sm:$0xf0] }
 0x1a2   :  { %v1233_v21 = vpop.f32.mrf.mxu0  ;;  %1960 = vmatpush.bf16.msra.mxu1 %v2718_v30  ;;  %v2627_v30 = vld [vmem:[%s4718_s3 + $0x48] sm:$0xf0] }
 0x1a3   :  { %v4268_v3 = vpop.f32.mrf.mxu3  ;;  %vm1521_vm10 = vcmp.gt.f32.partialorder %v1143_v54, 0.0  ;;  %v1553_v1 = vmul.f32 0.2, %v1143_v54  ;;  %v1234_v26 = vadd.f32 %v1233_v21, %v1185_v38  ;;  %v1282_v28 = vpop.f32.mrf.mxu1 }
 0x1a4   :  { %1817 = vmatpush.bf16.msra.mxu2 %v2618_v20 }
 0x1a5   :  { %v4276_v16 = vadd.f32 %v1282_v28, %v1234_v26  ;;  %1340 = vmatmul.bf16.gmra.mxu2 %v4758_v41  ;;  %1428 = vmatmul.bf16.gmra.mxu0 %v4759_v59  ;;  %v1585_v4 = vsel %vm1521_vm10, %v1143_v54, %v1553_v1  ;;  %v1190_v54 = vadd.f32 %v1189_v6, %v4191_v53  ;;  %v2593_v1 = vld [vmem:[%s4718_s3] sm:$0xf]  ;;  %v2818_v26 = vld [vmem:[%s4718_s3 + $0x4] sm:$0xf0] }
 0x1a6   :  { %2586 = vmatmul.msk.bf16.gmra.mxu1 %vm792_vm0, %v3918_v50  ;;  %v4289_v43 = vpack.c.bf16 %v1585_v4, %v1583_v63  ;;  %v2822_v50 = vld [vmem:[%s4718_s3 + $0x24] sm:$0xf0]  ;;  %v2594_v63 = vor.u32 %v2818_v26, %v2593_v1 }
 0x1a7   :  { %v2610_v15 = vor.u32 %v2822_v50, %v2609_v18 }
 0x1a8   :  { %1389 = vmatmul.bf16.gmra.mxu3 %v4760_v48  ;;  %v1145_v57 = vpop.f32.mrf.mxu2  ;;  %v4761_v48 = vld [vmem:[#allocation16_spill] sm:$0xff] }
 0x1a9   :  { %v1146_v42 = vadd.f32 %v1145_v57, %v4140_v58  ;;  %1818 = vmatpush.bf16.msra.mxu2 %v2610_v15  ;;  %v2831_v58 = vld [vmem:[%s4718_s3 + $0x74] sm:$0xf]  ;;  %v2846_v57 = vld [vmem:[%s4718_s3 + $0xe4] sm:$0xf0] }
 0x1aa   :  { %v1235_v36 = vpop.f32.mrf.mxu0  ;;  %v2654_v34 = vor.u32 %v2831_v58, %v2651_v22  ;;  %v2707_v58 = vld [vmem:[%s4718_s3 + $0xe8] sm:$0xf0]  ;;  %v2638_v22 = vor.u32 %v2827_v29, %v2635_v31  ;;  %v2843_v31 = vld [vmem:[%s4718_s3 + $0xd4] sm:$0xf] }
 0x1ab   :  { %v1194_v7 = vpop.f32.mrf.mxu3  ;;  %v1236_v61 = vadd.f32 %v1235_v36, %v1187_v40  ;;  %v1284_v23 = vpop.f32.mrf.mxu1  ;;  %v1555_v28 = vmul.f32 0.2, %v1146_v42  ;;  %vm1523_vm11 = vcmp.gt.f32.partialorder %v1146_v42, 0.0 }
 0x1ac   :  { %1911 = vmatpush.bf16.msra.mxu0 %v2654_v34 }
 0x1ad   :  { %v4306_v38 = vadd.f32 %v1284_v23, %v1236_v61  ;;  %1819 = vmatpush.bf16.msra.mxu2 %v2602_v51  ;;  %v1587_v44 = vsel %vm1523_vm11, %v1146_v42, %v1555_v28  ;;  %v2829_v42 = vld [vmem:[%s4718_s3 + $0x64] sm:$0xf]  ;;  %v1195_v51 = vadd.f32 %v1194_v7, %v4191_v53 }
 0x1b0   :  { %v1147_v21 = vpop.f32.mrf.mxu2 }
 0x1b1   :  { %v1148_v46 = vadd.f32 %v1147_v21, %v4160_v10  ;;  %1820 = vmatpush.bf16.msra.mxu2 %v2594_v63  ;;  %v2705_v10 = vld [vmem:[%s4718_s3 + $0xe0] sm:$0xf] }
 0x1b2   :  { %v1238_v6 = vpop.f32.mrf.mxu0  ;;  %v2706_v50 = vor.u32 %v2846_v57, %v2705_v10  ;;  %v2844_v10 = vld [vmem:[%s4718_s3 + $0xd4] sm:$0xf0] }
 0x1b3   :  { %v4328_v25 = vpop.f32.mrf.mxu3  ;;  %vm1525_vm12 = vcmp.gt.f32.partialorder %v1148_v46, 0.0  ;;  %v1557_v41 = vmul.f32 0.2, %v1148_v46  ;;  %v1239_v59 = vadd.f32 %v1238_v6, %v1190_v54  ;;  %v1287_v20 = vpop.f32.mrf.mxu1  ;;  %v2825_v54 = vld [vmem:[%s4718_s3 + $0x44] sm:$0xf] }
 0x1b4   :  { %1863 = vmatpush.bf16.msra.mxu3 %v2706_v50  ;;  %v2630_v26 = vor.u32 %v2825_v54, %v2627_v30  ;;  %v2823_v6 = vld [vmem:[%s4718_s3 + $0x34] sm:$0xf]  ;;  %v2841_v54 = vld [vmem:[%s4718_s3 + $0xc4] sm:$0xf] }
 0x1b5   :  { %v4330_v4 = vadd.f32 %v1287_v20, %v1239_v59  ;;  %1345 = vmatmul.bf16.gmra.mxu2 %v4761_v48  ;;  %1433 = vmatmul.bf16.gmra.mxu0 %v4762_v27  ;;  %v1589_v11 = vsel %vm1525_vm12, %v1148_v46, %v1557_v41  ;;  %v2619_v41 = vld [vmem:[%s4718_s3 + $0x38] sm:$0xf0]  ;;  %v4764_v48 = vld [vmem:[#allocation18_spill] sm:$0xff] }
 0x1b6   :  { %2587 = vmatmul.msk.bf16.gmra.mxu1 %vm792_vm0, %v3951_v14  ;;  %v4343_v18 = vpack.c.bf16 %v1589_v11, %v1587_v44  ;;  %v2622_v27 = vor.u32 %v2823_v6, %v2619_v41  ;;  %v2697_v11 = vld [vmem:[%s4718_s3 + $0xd0] sm:$0xf] }
 0x1b7   :  { %v2698_v50 = vor.u32 %v2844_v10, %v2697_v11  ;;  %v2839_v11 = vld [vmem:[%s4718_s3 + $0xb4] sm:$0xf]  ;;  %v2683_v10 = vld [vmem:[%s4718_s3 + $0xb8] sm:$0xf0] }
 0x1b8   :  { %1394 = vmatmul.bf16.gmra.mxu3 %v3832_v17  ;;  %v1150_v40 = vpop.f32.mrf.mxu2  ;;  %v2643_v17 = vld [vmem:[%s4718_s3 + $0x68] sm:$0xf0] }
 0x1b9   :  { %v1151_v14 = vadd.f32 %v1150_v40, %v4169_v49  ;;  %v2646_v36 = vor.u32 %v2829_v42, %v2643_v17  ;;  %v2845_v49 = vld [vmem:[%s4718_s3 + $0xe4] sm:$0xf]  ;;  %1864 = vmatpush.bf16.msra.mxu3 %v2698_v50 }
 0x1ba   :  { %v4352_v61 = vpop.f32.mrf.mxu0  ;;  %v2710_v33 = vor.u32 %v2845_v49, %v2707_v58  ;;  %v2821_v42 = vld [vmem:[%s4718_s3 + $0x24] sm:$0xf]  ;;  %v2699_v49 = vld [vmem:[%s4718_s3 + $0xd8] sm:$0xf0] }
 0x1bb   :  { %v1199_v15 = vpop.f32.mrf.mxu3  ;;  %v4354_v23 = vpop.f32.mrf.mxu1  ;;  %1912 = vmatpush.bf16.msra.mxu0 %v2646_v36  ;;  %v1559_v34 = vmul.f32 0.2, %v1151_v14  ;;  %vm1527_vm13 = vcmp.gt.f32.partialorder %v1151_v14, 0.0  ;;  %v2603_v58 = vld [vmem:[%s4718_s3 + $0x18] sm:$0xf0] }
 0x1bc   :  { %1961 = vmatpush.bf16.msra.mxu1 %v2710_v33 }
 0x1bd   :  { %v1591_v59 = vsel %vm1527_vm13, %v1151_v14, %v1559_v34  ;;  %v2689_v34 = vld [vmem:[%s4718_s3 + $0xc0] sm:$0xf] }
 0x1bf   :  { %1913 = vmatpush.bf16.msra.mxu0 %v2638_v22  ;;  %v2702_v22 = vor.u32 %v2843_v31, %v2699_v49  ;;  %v2673_v31 = vld [vmem:[%s4718_s3 + $0xa0] sm:$0xf]  ;;  %v2837_v49 = vld [vmem:[%s4718_s3 + $0xa4] sm:$0xf] }
 0x1c0   :  { %v1152_v13 = vpop.f32.mrf.mxu2 }
 0x1c1   :  { %v1153_v21 = vadd.f32 %v1152_v13, %v4176_v5  ;;  %v4763_v5 = vld [vmem:[#allocation19_spill] sm:$0xff]  ;;  %1962 = vmatpush.bf16.msra.mxu1 %v2702_v22  ;;  %v2842_v13 = vld [vmem:[%s4718_s3 + $0xc4] sm:$0xf0] }
 0x1c2   :  { %v1243_v28 = vpop.f32.mrf.mxu0 }
 0x1c3   :  { %v4376_v1 = vpop.f32.mrf.mxu3  ;;  %vm1529_vm14 = vcmp.gt.f32.partialorder %v1153_v21, 0.0  ;;  %v1561_v7 = vmul.f32 0.2, %v1153_v21  ;;  %v1244_v46 = vadd.f32 %v1243_v28, %v1195_v51  ;;  %v1292_v63 = vpop.f32.mrf.mxu1  ;;  %1914 = vmatpush.bf16.msra.mxu0 %v2630_v26  ;;  %v1200_v51 = vadd.f32 %v1199_v15, %v4191_v53  ;;  %v2691_v15 = vld [vmem:[%s4718_s3 + $0xc8] sm:$0xf0] }
 0x1c4   :  { %v2817_v26 = vld [vmem:[%s4718_s3 + $0x4] sm:$0xf]  ;;  %v2595_v28 = vld [vmem:[%s4718_s3 + $0x8] sm:$0xf0] }
 0x1c5   :  { %v4384_v20 = vadd.f32 %v1292_v63, %v1244_v46  ;;  %1350 = vmatmul.bf16.gmra.mxu2 %v4763_v5  ;;  %1438 = vmatmul.bf16.gmra.mxu0 %v4764_v48  ;;  %v1593_v44 = vsel %vm1529_vm14, %v1153_v21, %v1561_v7  ;;  %v2690_v21 = vor.u32 %v2842_v13, %v2689_v34  ;;  %v2665_v13 = vld [vmem:[%s4718_s3 + $0x90] sm:$0xf] }
 0x1c6   :  { %2588 = vmatmul.msk.bf16.gmra.mxu1 %vm792_vm0, %v4016_v52  ;;  %v4397_v57 = vpack.c.bf16 %v1593_v44, %v1591_v59  ;;  %v2694_v63 = vor.u32 %v2841_v54, %v2691_v15  ;;  %v2598_v6 = vor.u32 %v2817_v26, %v2595_v28  ;;  %v2681_v44 = vld [vmem:[%s4718_s3 + $0xb0] sm:$0xf]  ;;  %v2836_v54 = vld [vmem:[%s4718_s3 + $0x94] sm:$0xf0]  ;;  %v2667_v15 = vld [vmem:[%s4718_s3 + $0x98] sm:$0xf0] }
 0x1c7   :  { %1915 = vmatpush.bf16.msra.mxu0 %v2622_v27  ;;  %1865 = vmatpush.bf16.msra.mxu3 %v2690_v21  ;;  %v2666_v21 = vor.u32 %v2836_v54, %v2665_v13 }
 0x1c8   :  { %1399 = vmatmul.bf16.gmra.mxu3 %v3874_v47  ;;  %v1155_v40 = vpop.f32.mrf.mxu2  ;;  %v2611_v47 = vld [vmem:[%s4718_s3 + $0x28] sm:$0xf0]  ;;  %1963 = vmatpush.bf16.msra.mxu1 %v2694_v63  ;;  %v2834_v63 = vld [vmem:[%s4718_s3 + $0x84] sm:$0xf0] }
 0x1c9   :  { %v1156_v52 = vadd.f32 %v1155_v40, %v4179_v0  ;;  %v2614_v14 = vor.u32 %v2821_v42, %v2611_v47  ;;  %v2819_v0 = vld [vmem:[%s4718_s3 + $0x14] sm:$0xf]  ;;  %v2686_v42 = vor.u32 %v2839_v11, %v2683_v10 }
 0x1ca   :  { %v4408_v36 = vpop.f32.mrf.mxu0  ;;  %v2606_v33 = vor.u32 %v2819_v0, %v2603_v58  ;;  %v2675_v58 = vld [vmem:[%s4718_s3 + $0xa8] sm:$0xf0] }
 0x1cb   :  { %v4406_v17 = vpop.f32.mrf.mxu3  ;;  %v4410_v29 = vpop.f32.mrf.mxu1  ;;  %1916 = vmatpush.bf16.msra.mxu0 %v2614_v14  ;;  %v1563_v41 = vmul.f32 0.2, %v1156_v52  ;;  %vm1531_vm15 = vcmp.gt.f32.partialorder %v1156_v52, 0.0 }
 0x1cc   :  { %1964 = vmatpush.bf16.msra.mxu1 %v2686_v42  ;;  %v1205_v28 = vadd.f32 %v4406_v17, %v4191_v53  ;;  %v2659_v17 = vld [vmem:[%s4718_s3 + $0x88] sm:$0xf0] }
 0x1cd   :  { %v1595_v47 = vsel %vm1531_vm15, %v1156_v52, %v1563_v41 }
 0x1cf   :  { %1917 = vmatpush.bf16.msra.mxu0 %v2606_v33  ;;  %v2678_v33 = vor.u32 %v2837_v49, %v2675_v58 }
 0x1d0   :  { %v1157_v30 = vpop.f32.mrf.mxu2 }
 0x1d1   :  { %v1158_v7 = vadd.f32 %v1157_v30, %v4193_v24  ;;  %v2840_v24 = vld [vmem:[%s4718_s3 + $0xb4] sm:$0xf0]  ;;  %1965 = vmatpush.bf16.msra.mxu1 %v2678_v33  ;;  %v2835_v30 = vld [vmem:[%s4718_s3 + $0x94] sm:$0xf] }
 0x1d2   :  { %v1248_v59 = vpop.f32.mrf.mxu0  ;;  %v2682_v40 = vor.u32 %v2840_v24, %v2681_v44  ;;  %v2670_v26 = vor.u32 %v2835_v30, %v2667_v15 }
 0x1d3   :  { %v4444_v46 = vpop.f32.mrf.mxu3  ;;  %vm1533_vm1 = vcmp.gt.f32.partialorder %v1158_v7, 0.0  ;;  %v1565_v5 = vmul.f32 0.2, %v1158_v7  ;;  %v1249_v48 = vadd.f32 %v1248_v59, %v1200_v51  ;;  %v1297_v27 = vpop.f32.mrf.mxu1  ;;  %1918 = vmatpush.bf16.msra.mxu0 %v2598_v6  ;;  %v2833_v6 = vld [vmem:[%s4718_s3 + $0x84] sm:$0xf] }
 0x1d4   :  { %1866 = vmatpush.bf16.msra.mxu3 %v2682_v40 }
 0x1d5   :  { %v4458_v50 = vadd.f32 %v1297_v27, %v1249_v48  ;;  %1443 = vmatmul.bf16.gmra.mxu0 %v3839_v35  ;;  %1821 = vmatmul.bf16.vlgmr.msra.gmra.mxu2 %v4183_v9  ;;  %v1597_v14 = vsel %vm1533_vm1, %v1158_v7, %v1565_v5  ;;  %v2838_v35 = vld [vmem:[%s4718_s3 + $0xa4] sm:$0xf0]  ;;  %v2657_v7 = vld [vmem:[%s4718_s3 + $0x80] sm:$0xf]  ;;  %v2662_v48 = vor.u32 %v2833_v6, %v2659_v17 }
 0x1d6   :  { %2589 = vmatmul.msk.bf16.gmra.mxu1 %vm792_vm0, %v4093_v8  ;;  %v4475_v0 = vpack.c.bf16 %v1597_v14, %v1595_v47  ;;  %v2674_v52 = vor.u32 %v2838_v35, %v2673_v31  ;;  %v2658_v59 = vor.u32 %v2834_v63, %v2657_v7 }
 0x1d7   :  { %1966 = vmatpush.bf16.msra.mxu1 %v2670_v26 }
 0x1d8   :  { %v1316_v8 = vpop.f32.mrf.mxu2  ;;  %1867 = vmatpush.bf16.msra.mxu3 %v2674_v52 }
 0x1d9   :  { %v1317_v14 = vadd.f32 %v1316_v8, %v4197_v62 }
 0x1da   :  { %v4480_v51 = vpop.f32.mrf.mxu0 }
 0x1db   :  { %v1365_v22 = vpop.f32.mrf.mxu3  ;;  %v4482_v34 = vpop.f32.mrf.mxu1  ;;  %1967 = vmatpush.bf16.msra.mxu1 %v2662_v48 }
 0x1dc   :  { %1868 = vmatpush.bf16.msra.mxu3 %v2666_v21  ;;  %v1366_v52 = vadd.f32 %v1365_v22, %v1317_v14 }
 0x1e0   :  { %v1318_v41 = vpop.f32.mrf.mxu2  ;;  %1869 = vmatpush.bf16.msra.mxu3 %v2658_v59 }
 0x1e2   :  { %v1253_v27 = vpop.f32.mrf.mxu0 }
 0x1e3   :  { %v1367_v5 = vpop.f32.mrf.mxu3  ;;  %v1254_v44 = vadd.f32 %v1253_v27, %v1205_v28  ;;  %v1302_v24 = vpop.f32.mrf.mxu1 }
 0x1e5   :  { %v4510_v11 = vadd.f32 %v1302_v24, %v1254_v44  ;;  %1448 = vmatmul.bf16.gmra.mxu0 %v3878_v45  ;;  %1826 = vmatmul.bf16.gmra.mxu2 %v4204_v60  ;;  %v1319_v45 = vadd.f32 %v1318_v41, %v4208_v55 }
 0x1e6   :  { %2590 = vmatmul.msk.bf16.gmra.mxu1 %vm792_vm0, %v4132_v39 }
 0x1e7   :  { %v1368_v13 = vadd.f32 %v1367_v5, %v1319_v45 }
 0x1e8   :  { %v1321_v10 = vpop.f32.mrf.mxu2 }
 0x1e9   :  { %v1322_v22 = vadd.f32 %v1321_v10, %v4212_v32 }
 0x1ea   :  { %v4516_v42 = vpop.f32.mrf.mxu0 }
 0x1eb   :  { %v1370_v40 = vpop.f32.mrf.mxu3  ;;  %v4518_v47 = vpop.f32.mrf.mxu1 }
 0x1ec   :  { %v1371_v59 = vadd.f32 %v1370_v40, %v1322_v22 }
 0x1f0   :  { %v1323_v31 = vpop.f32.mrf.mxu2 }
 0x1f1   :  { %v1324_v5 = vadd.f32 %v1323_v31, %v4223_v19 }
 0x1f2   :  { %v1414_v49 = vpop.f32.mrf.mxu0 }
 0x1f3   :  { %v1372_v35 = vpop.f32.mrf.mxu3  ;;  %v1463_v58 = vpop.f32.mrf.mxu1  ;;  %v1415_v33 = vadd.f32 %v1414_v49, %v1366_v52 }
 0x1f4   :  { %v1373_v27 = vadd.f32 %v1372_v35, %v1324_v5 }
 0x1f5   :  { %1831 = vmatmul.bf16.gmra.mxu2 %v4219_v56  ;;  %1919 = vmatmul.bf16.vlgmr.msra.gmra.mxu0 %v4183_v9  ;;  %v1464_v54 = vadd.f32 %v1463_v58, %v1415_v33 }
 0x1f7   :  { %v1536_v62 = vmul.f32 0.2, %v1464_v54  ;;  %vm1504_vm0 = vcmp.gt.f32.partialorder %v1464_v54, 0.0 }
 0x1f8   :  { %v1326_v39 = vpop.f32.mrf.mxu2 }
 0x1f9   :  { %v1568_v7 = vsel %vm1504_vm0, %v1464_v54, %v1536_v62  ;;  %v1327_v40 = vadd.f32 %v1326_v39, %v4235_v12 }
 0x1fa   :  { %v1416_v21 = vpop.f32.mrf.mxu0 }
 0x1fb   :  { %v1375_v30 = vpop.f32.mrf.mxu3  ;;  %v1417_v15 = vadd.f32 %v1416_v21, %v1368_v13  ;;  %v1465_v26 = vpop.f32.mrf.mxu1 }
 0x1fd   :  { %v1466_v8 = vadd.f32 %v1465_v26, %v1417_v15 }
 0x1ff   :  { %vm1506_vm2 = vcmp.gt.f32.partialorder %v1466_v8, 0.0  ;;  %v1538_v28 = vmul.f32 0.2, %v1466_v8 }
 0x200   :  { %v1328_v55 = vpop.f32.mrf.mxu2 }
 0x201   :  { %v1570_v63 = vsel %vm1506_vm2, %v1466_v8, %v1538_v28  ;;  %v1329_v35 = vadd.f32 %v1328_v55, %v4258_v37 }
 0x202   :  { %v1600_v6 = vpack.c.bf16 %v1570_v63, %v1568_v7  ;;  %v1419_v9 = vpop.f32.mrf.mxu0 }
 0x203   :  { %v1377_v41 = vpop.f32.mrf.mxu3  ;;  %v1468_v17 = vpop.f32.mrf.mxu1  ;;  %v1420_v48 = vadd.f32 %v1419_v9, %v1371_v59 }
 0x204   :  { %1870 = vmatmul.bf16.vlgmr.msra.gmra.mxu3 %v1600_v6  ;;  %1968 = vmatmul.bf16.vlgmr.msra.gmra.mxu1 %v1600_v6  ;;  %v1378_v39 = vadd.f32 %v1377_v41, %v1329_v35 }
 0x205   :  { %1836 = vmatmul.bf16.gmra.mxu2 %v4242_v2  ;;  %1924 = vmatmul.bf16.gmra.mxu0 %v4204_v60  ;;  %v1469_v44 = vadd.f32 %v1468_v17, %v1420_v48  ;;  %v1376_v60 = vadd.f32 %v1375_v30, %v1327_v40 }
 0x207   :  { %v1540_v52 = vmul.f32 0.2, %v1469_v44  ;;  %vm1508_vm3 = vcmp.gt.f32.partialorder %v1469_v44, 0.0 }
 0x208   :  { %v1331_v32 = vpop.f32.mrf.mxu2 }
 0x209   :  { %v1572_v31 = vsel %vm1508_vm3, %v1469_v44, %v1540_v52  ;;  %v1332_v30 = vadd.f32 %v1331_v32, %v4276_v16 }
 0x20a   :  { %v1421_v24 = vpop.f32.mrf.mxu0 }
 0x20b   :  { %v1422_v10 = vadd.f32 %v1421_v24, %v1373_v27  ;;  %v1470_v14 = vpop.f32.mrf.mxu1  ;;  %v1380_v49 = vpop.f32.mrf.mxu3 }
 0x20c   :  { %v1381_v5 = vadd.f32 %v1380_v49, %v1332_v30  ;;  %v1192_v49 = vadd.f32 %v4268_v3, %v4191_v53 }
 0x20d   :  { %v1471_v58 = vadd.f32 %v1470_v14, %v1422_v10 }
 0x20f   :  { %vm1510_vm4 = vcmp.gt.f32.partialorder %v1471_v58, 0.0  ;;  %v1542_v45 = vmul.f32 0.2, %v1471_v58 }
 0x210   :  { %v1333_v19 = vpop.f32.mrf.mxu2 }
 0x211   :  { %v1574_v33 = vsel %vm1510_vm4, %v1471_v58, %v1542_v45  ;;  %v1334_v41 = vadd.f32 %v1333_v19, %v4306_v38  ;;  %v1241_v38 = vadd.f32 %v4352_v61, %v1192_v49 }
 0x212   :  { %v1424_v13 = vpop.f32.mrf.mxu0  ;;  %v1602_v54 = vpack.c.bf16 %v1574_v33, %v1572_v31 }
 0x213   :  { %v1473_v21 = vpop.f32.mrf.mxu1  ;;  %v1425_v15 = vadd.f32 %v1424_v13, %v1376_v60  ;;  %v1382_v26 = vpop.f32.mrf.mxu3 }
 0x214   :  { %1875 = vmatmul.bf16.gmra.mxu3 %v1602_v54  ;;  %1973 = vmatmul.bf16.gmra.mxu1 %v1602_v54  ;;  %v1383_v16 = vadd.f32 %v1382_v26, %v1334_v41  ;;  %v1290_v54 = vadd.f32 %v4354_v23, %v1241_v38  ;;  %v1197_v23 = vadd.f32 %v4328_v25, %v4191_v53 }
 0x215   :  { %1841 = vmatmul.bf16.gmra.mxu2 %v4289_v43  ;;  %1929 = vmatmul.bf16.gmra.mxu0 %v4219_v56  ;;  %v1474_v62 = vadd.f32 %v1473_v21, %v1425_v15 }
 0x217   :  { %v1544_v7 = vmul.f32 0.2, %v1474_v62  ;;  %vm1512_vm5 = vcmp.gt.f32.partialorder %v1474_v62, 0.0 }
 0x218   :  { %v1336_v12 = vpop.f32.mrf.mxu2 }
 0x219   :  { %v1576_v9 = vsel %vm1512_vm5, %v1474_v62, %v1544_v7  ;;  %v1337_v45 = vadd.f32 %v1336_v12, %v4330_v4 }
 0x21a   :  { %v1426_v8 = vpop.f32.mrf.mxu0 }
 0x21b   :  { %v1427_v22 = vadd.f32 %v1426_v8, %v1378_v39  ;;  %v1475_v28 = vpop.f32.mrf.mxu1  ;;  %v1385_v37 = vpop.f32.mrf.mxu3 }
 0x21c   :  { %v1386_v60 = vadd.f32 %v1385_v37, %v1337_v45 }
 0x21d   :  { %v1476_v63 = vadd.f32 %v1475_v28, %v1427_v22 }
 0x21f   :  { %vm1514_vm6 = vcmp.gt.f32.partialorder %v1476_v63, 0.0  ;;  %v1546_v6 = vmul.f32 0.2, %v1476_v63 }
 0x220   :  { %v1338_v55 = vpop.f32.mrf.mxu2 }
 0x221   :  { %v1578_v59 = vsel %vm1514_vm6, %v1476_v63, %v1546_v6  ;;  %v1339_v3 = vadd.f32 %v1338_v55, %v1290_v54  ;;  %v1246_v63 = vadd.f32 %v4408_v36, %v1197_v23 }
 0x222   :  { %v1429_v17 = vpop.f32.mrf.mxu0  ;;  %v1604_v56 = vpack.c.bf16 %v1578_v59, %v1576_v9 }
 0x223   :  { %v1478_v48 = vpop.f32.mrf.mxu1  ;;  %v1430_v27 = vadd.f32 %v1429_v17, %v1381_v5  ;;  %v1387_v24 = vpop.f32.mrf.mxu3  ;;  %v1295_v59 = vadd.f32 %v4410_v29, %v1246_v63  ;;  %v1202_v29 = vadd.f32 %v4376_v1, %v4191_v53 }
 0x224   :  { %1880 = vmatmul.bf16.gmra.mxu3 %v1604_v56  ;;  %1978 = vmatmul.bf16.gmra.mxu1 %v1604_v56  ;;  %v1388_v4 = vadd.f32 %v1387_v24, %v1339_v3 }
 0x225   :  { %1846 = vmatmul.bf16.gmra.mxu2 %v4343_v18  ;;  %1934 = vmatmul.bf16.gmra.mxu0 %v4242_v2  ;;  %v1479_v32 = vadd.f32 %v1478_v48, %v1430_v27 }
 0x227   :  { %v1548_v58 = vmul.f32 0.2, %v1479_v32  ;;  %vm1516_vm7 = vcmp.gt.f32.partialorder %v1479_v32, 0.0 }
 0x228   :  { %v1341_v44 = vpop.f32.mrf.mxu2 }
 0x229   :  { %v1580_v2 = vsel %vm1516_vm7, %v1479_v32, %v1548_v58  ;;  %v1342_v30 = vadd.f32 %v1341_v44, %v4384_v20 }
 0x22a   :  { %v1431_v10 = vpop.f32.mrf.mxu0 }
 0x22b   :  { %v1432_v14 = vadd.f32 %v1431_v10, %v1383_v16  ;;  %v1480_v52 = vpop.f32.mrf.mxu1  ;;  %v1390_v15 = vpop.f32.mrf.mxu3  ;;  %v1251_v10 = vadd.f32 %v4480_v51, %v1202_v29 }
 0x22c   :  { %v1391_v17 = vadd.f32 %v1390_v15, %v1342_v30  ;;  %v1207_v15 = vadd.f32 %v4444_v46, %v4191_v53 }
 0x22d   :  { %v1481_v40 = vadd.f32 %v1480_v52, %v1432_v14 }
 0x22f   :  { %vm1518_vm8 = vcmp.gt.f32.partialorder %v1481_v40, 0.0  ;;  %v1550_v19 = vmul.f32 0.2, %v1481_v40 }
 0x230   :  { %v1343_v21 = vpop.f32.mrf.mxu2 }
 0x231   :  { %v1582_v31 = vsel %vm1518_vm8, %v1481_v40, %v1550_v19  ;;  %v1344_v25 = vadd.f32 %v1343_v21, %v1295_v59  ;;  %v1300_v19 = vadd.f32 %v4482_v34, %v1251_v10 }
 0x232   :  { %v1434_v33 = vpop.f32.mrf.mxu0  ;;  %v1606_v13 = vpack.c.bf16 %v1582_v31, %v1580_v2 }
 0x233   :  { %v1483_v35 = vpop.f32.mrf.mxu1  ;;  %v1435_v26 = vadd.f32 %v1434_v33, %v1386_v60  ;;  %v1392_v7 = vpop.f32.mrf.mxu3 }
 0x234   :  { %1885 = vmatmul.bf16.gmra.mxu3 %v1606_v13  ;;  %1983 = vmatmul.bf16.gmra.mxu1 %v1606_v13  ;;  %v1393_v48 = vadd.f32 %v1392_v7, %v1344_v25 }
 0x235   :  { %1851 = vmatmul.bf16.gmra.mxu2 %v4397_v57  ;;  %1939 = vmatmul.bf16.gmra.mxu0 %v4289_v43  ;;  %v1484_v61 = vadd.f32 %v1483_v35, %v1435_v26  ;;  %v1256_v26 = vadd.f32 %v4516_v42, %v1207_v15 }
 0x237   :  { %v1552_v8 = vmul.f32 0.2, %v1484_v61  ;;  %vm1520_vm9 = vcmp.gt.f32.partialorder %v1484_v61, 0.0  ;;  %v1305_v23 = vadd.f32 %v4518_v47, %v1256_v26 }
 0x238   :  { %v1346_v22 = vpop.f32.mrf.mxu2 }
 0x239   :  { %v1584_v43 = vsel %vm1520_vm9, %v1484_v61, %v1552_v8  ;;  %v1347_v14 = vadd.f32 %v1346_v22, %v4458_v50 }
 0x23a   :  { %v1436_v12 = vpop.f32.mrf.mxu0 }
 0x23b   :  { %v1437_v39 = vadd.f32 %v1436_v12, %v1388_v4  ;;  %v1485_v62 = vpop.f32.mrf.mxu1  ;;  %v1395_v20 = vpop.f32.mrf.mxu3 }
 0x23c   :  { %v1396_v2 = vadd.f32 %v1395_v20, %v1347_v14 }
 0x23d   :  { %v1486_v28 = vadd.f32 %v1485_v62, %v1437_v39 }
 0x23f   :  { %vm1522_vm10 = vcmp.gt.f32.partialorder %v1486_v28, 0.0  ;;  %v1554_v6 = vmul.f32 0.2, %v1486_v28 }
 0x240   :  { %v1348_v36 = vpop.f32.mrf.mxu2 }
 0x241   :  { %v1586_v37 = vsel %vm1522_vm10, %v1486_v28, %v1554_v6  ;;  %v1349_v1 = vadd.f32 %v1348_v36, %v1300_v19 }
 0x242   :  { %v1439_v55 = vpop.f32.mrf.mxu0  ;;  %v1608_v9 = vpack.c.bf16 %v1586_v37, %v1584_v43 }
 0x243   :  { %v1488_v56 = vpop.f32.mrf.mxu1  ;;  %v1440_v5 = vadd.f32 %v1439_v55, %v1391_v17  ;;  %v1397_v40 = vpop.f32.mrf.mxu3 }
 0x244   :  { %1890 = vmatmul.bf16.gmra.mxu3 %v1608_v9  ;;  %1988 = vmatmul.bf16.gmra.mxu1 %v1608_v9  ;;  %v1398_v51 = vadd.f32 %v1397_v40, %v1349_v1 }
 0x245   :  { %1856 = vmatmul.bf16.gmra.mxu2 %v4475_v0  ;;  %1944 = vmatmul.bf16.gmra.mxu0 %v4343_v18  ;;  %v1489_v41 = vadd.f32 %v1488_v56, %v1440_v5  ;;  %v1647_v5 = vld [vmem:[%s4719_s4] sm:$0x3] }
 0x246   :  { %v4565_v36 = vperm.slane %v1647_v5, 1 }
 0x247   :  { %v1556_v44 = vmul.f32 0.2, %v1489_v41  ;;  %vm1524_vm11 = vcmp.gt.f32.partialorder %v1489_v41, 0.0 }
 0x248   :  { %v1351_v18 = vpop.f32.mrf.mxu2 }
 0x249   :  { %v1588_v49 = vsel %vm1524_vm11, %v1489_v41, %v1556_v44  ;;  %v1352_v4 = vadd.f32 %v1351_v18, %v4510_v11  ;;  %v4568_v41 = vperm.slane %v1647_v5, 0 }
 0x24a   :  { %v1441_v27 = vpop.f32.mrf.mxu0 }
 0x24b   :  { %v1442_v16 = vadd.f32 %v1441_v27, %v1393_v48  ;;  %v1490_v32 = vpop.f32.mrf.mxu1  ;;  %v1400_v35 = vpop.f32.mrf.mxu3 }
 0x24c   :  { %v1401_v8 = vadd.f32 %v1400_v35, %v1352_v4 }
 0x24d   :  { %v1491_v24 = vadd.f32 %v1490_v32, %v1442_v16 }
 0x24f   :  { %vm1526_vm12 = vcmp.gt.f32.partialorder %v1491_v24, 0.0  ;;  %v1558_v52 = vmul.f32 0.2, %v1491_v24 }
 0x250   :  { %v1353_v54 = vpop.f32.mrf.mxu2 }
 0x251   :  { %v1590_v58 = vsel %vm1526_vm12, %v1491_v24, %v1558_v52  ;;  %v1354_v53 = vadd.f32 %v1353_v54, %v1305_v23 }
 0x252   :  { %v1444_v38 = vpop.f32.mrf.mxu0  ;;  %v1610_v45 = vpack.c.bf16 %v1590_v58, %v1588_v49 }
 0x253   :  { %v1493_v31 = vpop.f32.mrf.mxu1  ;;  %v1445_v33 = vadd.f32 %v1444_v38, %v1396_v2  ;;  %v1402_v42 = vpop.f32.mrf.mxu3 }
 0x254   :  { %1895 = vmatmul.bf16.gmra.mxu3 %v1610_v45  ;;  %1993 = vmatmul.bf16.gmra.mxu1 %v1610_v45  ;;  %v1403_v7 = vadd.f32 %v1402_v42, %v1354_v53 }
 0x255   :  { %1949 = vmatmul.bf16.gmra.mxu0 %v4397_v57  ;;  %v1494_v50 = vadd.f32 %v1493_v31, %v1445_v33 }
 0x257   :  { %v1560_v3 = vmul.f32 0.2, %v1494_v50  ;;  %vm1528_vm13 = vcmp.gt.f32.partialorder %v1494_v50, 0.0 }
 0x258   :  { %v1822_v46 = vpop.f32.mrf.mxu2 }
 0x259   :  { %v1592_v57 = vsel %vm1528_vm13, %v1494_v50, %v1560_v3  ;;  %v1823_v29 = vadd.f32 %v1822_v46, %v4568_v41 }
 0x25a   :  { %v1446_v13 = vpop.f32.mrf.mxu0 }
 0x25b   :  { %v1447_v60 = vadd.f32 %v1446_v13, %v1398_v51  ;;  %v1495_v21 = vpop.f32.mrf.mxu1 }
 0x25d   :  { %v1496_v34 = vadd.f32 %v1495_v21, %v1447_v60 }
 0x25f   :  { %vm1530_vm14 = vcmp.gt.f32.partialorder %v1496_v34, 0.0  ;;  %v1562_v61 = vmul.f32 0.2, %v1496_v34 }
 0x260   :  { %v1824_v55 = vpop.f32.mrf.mxu2 }
 0x261   :  { %v1594_v12 = vsel %vm1530_vm14, %v1496_v34, %v1562_v61  ;;  %v1825_v38 = vadd.f32 %v1824_v55, %v4568_v41 }
 0x262   :  { %v1449_v39 = vpop.f32.mrf.mxu0  ;;  %v1612_v62 = vpack.c.bf16 %v1594_v12, %v1592_v57 }
 0x263   :  { %v1498_v22 = vpop.f32.mrf.mxu1  ;;  %v1450_v28 = vadd.f32 %v1449_v39, %v1401_v8 }
 0x264   :  { %1900 = vmatmul.bf16.gmra.mxu3 %v1612_v62  ;;  %1998 = vmatmul.bf16.gmra.mxu1 %v1612_v62 }
 0x265   :  { %1954 = vmatmul.bf16.gmra.mxu0 %v4475_v0  ;;  %v1499_v11 = vadd.f32 %v1498_v22, %v1450_v28 }
 0x267   :  { %v1564_v43 = vmul.f32 0.2, %v1499_v11  ;;  %vm1532_vm15 = vcmp.gt.f32.partialorder %v1499_v11, 0.0 }
 0x268   :  { %v1827_v25 = vpop.f32.mrf.mxu2 }
 0x269   :  { %v1596_v9 = vsel %vm1532_vm15, %v1499_v11, %v1564_v43  ;;  %v1828_v3 = vadd.f32 %v1827_v25, %v4568_v41 }
 0x26a   :  { %v1451_v63 = vpop.f32.mrf.mxu0 }
 0x26b   :  { %v1452_v30 = vadd.f32 %v1451_v63, %v1403_v7  ;;  %v1500_v6 = vpop.f32.mrf.mxu1 }
 0x26d   :  { %v1501_v37 = vadd.f32 %v1500_v6, %v1452_v30 }
 0x26f   :  { %vm1534_vm1 = vcmp.gt.f32.partialorder %v1501_v37, 0.0  ;;  %v1566_v47 = vmul.f32 0.2, %v1501_v37 }
 0x270   :  { %v1829_v32 = vpop.f32.mrf.mxu2 }
 0x271   :  { %v1598_v59 = vsel %vm1534_vm1, %v1501_v37, %v1566_v47  ;;  %v1830_v8 = vadd.f32 %v1829_v32, %v4568_v41 }
 0x272   :  { %v1920_v17 = vpop.f32.mrf.mxu0  ;;  %v1614_v56 = vpack.c.bf16 %v1598_v59, %v1596_v9 }
 0x273   :  { %v1921_v20 = vadd.f32 %v1920_v17, %v4565_v36 }
 0x274   :  { %1905 = vmatmul.bf16.gmra.mxu3 %v1614_v56  ;;  %2003 = vmatmul.bf16.gmra.mxu1 %v1614_v56 }
 0x278   :  { %v1832_v40 = vpop.f32.mrf.mxu2 }
 0x279   :  { %v1833_v59 = vadd.f32 %v1832_v40, %v4568_v41 }
 0x27a   :  { %v1922_v0 = vpop.f32.mrf.mxu0 }
 0x27b   :  { %v1923_v24 = vadd.f32 %v1922_v0, %v4565_v36 }
 0x280   :  { %v1834_v34 = vpop.f32.mrf.mxu2 }
 0x281   :  { %v1969_v48 = vpop.f32.mrf.mxu1  ;;  %v1835_v32 = vadd.f32 %v1834_v34, %v4568_v41 }
 0x282   :  { %v1970_v27 = vadd.f32 %v1969_v48, %v1921_v20  ;;  %v1925_v16 = vpop.f32.mrf.mxu0 }
 0x283   :  { %v1926_v1 = vadd.f32 %v1925_v16, %v4565_v36 }
 0x284   :  { %v2042_v52 = vmul.f32 0.2, %v1970_v27  ;;  %vm2010_vm0 = vcmp.gt.f32.partialorder %v1970_v27, 0.0 }
 0x286   :  { %v4573_v45 = vsel %vm2010_vm0, %v1970_v27, %v2042_v52 }
 0x287   :  { %v1871_v44 = vpop.f32.mrf.mxu3 }
 0x288   :  { %v1872_v10 = vadd.f32 %v1871_v44, %v1823_v29  ;;  %v1837_v63 = vpop.f32.mrf.mxu2 }
 0x289   :  { %v1971_v14 = vpop.f32.mrf.mxu1 }
 0x28a   :  { %v1972_v18 = vadd.f32 %v1971_v14, %v1923_v24  ;;  %v1927_v49 = vpop.f32.mrf.mxu0  ;;  %v2041_v33 = vmul.f32 0.2, %v1872_v10  ;;  %vm2009_vm3 = vcmp.gt.f32.partialorder %v1872_v10, 0.0 }
 0x28b   :  { %v1928_v4 = vadd.f32 %v1927_v49, %v4565_v36 }
 0x28c   :  { %vm2012_vm2 = vcmp.gt.f32.partialorder %v1972_v18, 0.0  ;;  %v2044_v58 = vmul.f32 0.2, %v1972_v18  ;;  %v4580_v21 = vsel %vm2009_vm3, %v1872_v10, %v2041_v33 }
 0x28e   :  { %v4575_v19 = vsel %vm2012_vm2, %v1972_v18, %v2044_v58 }
 0x28f   :  { %v1873_v2 = vpop.f32.mrf.mxu3 }
 0x290   :  { %v1874_v51 = vadd.f32 %v1873_v2, %v1825_v38  ;;  %v1839_v27 = vpop.f32.mrf.mxu2 }
 0x291   :  { %v1974_v50 = vpop.f32.mrf.mxu1 }
 0x292   :  { %vm2011_vm4 = vcmp.gt.f32.partialorder %v1874_v51, 0.0  ;;  %v2043_v13 = vmul.f32 0.2, %v1874_v51  ;;  %v1975_v54 = vadd.f32 %v1974_v50, %v1926_v1  ;;  %v1930_v60 = vpop.f32.mrf.mxu0  ;;  %v1838_v50 = vadd.f32 %v1837_v63, %v4568_v41 }
 0x293   :  { %v1931_v42 = vadd.f32 %v1930_v60, %v4565_v36 }
 0x294   :  { %v4582_v35 = vsel %vm2011_vm4, %v1874_v51, %v2043_v13  ;;  %v2046_v12 = vmul.f32 0.2, %v1975_v54  ;;  %vm2014_vm5 = vcmp.gt.f32.partialorder %v1975_v54, 0.0 }
 0x296   :  { %v4589_v22 = vsel %vm2014_vm5, %v1975_v54, %v2046_v12 }
 0x297   :  { %v1876_v26 = vpop.f32.mrf.mxu3 }
 0x298   :  { %v1877_v61 = vadd.f32 %v1876_v26, %v1828_v3  ;;  %v1842_v33 = vpop.f32.mrf.mxu2 }
 0x299   :  { %v1976_v57 = vpop.f32.mrf.mxu1 }
 0x29a   :  { %v1977_v39 = vadd.f32 %v1976_v57, %v1928_v4  ;;  %v1932_v62 = vpop.f32.mrf.mxu0  ;;  %v2045_v7 = vmul.f32 0.2, %v1877_v61  ;;  %vm2013_vm7 = vcmp.gt.f32.partialorder %v1877_v61, 0.0  ;;  %v1840_v57 = vadd.f32 %v1839_v27, %v4568_v41 }
 0x29b   :  { %v1933_v56 = vadd.f32 %v1932_v62, %v4565_v36 }
 0x29c   :  { %vm2016_vm6 = vcmp.gt.f32.partialorder %v1977_v39, 0.0  ;;  %v2048_v23 = vmul.f32 0.2, %v1977_v39  ;;  %v4596_v55 = vsel %vm2013_vm7, %v1877_v61, %v2045_v7 }
 0x29e   :  { %v4591_v53 = vsel %vm2016_vm6, %v1977_v39, %v2048_v23 }
 0x29f   :  { %v1878_v46 = vpop.f32.mrf.mxu3 }
 0x2a0   :  { %v1879_v11 = vadd.f32 %v1878_v46, %v1830_v8  ;;  %v1844_v62 = vpop.f32.mrf.mxu2 }
 0x2a1   :  { %v1979_v30 = vpop.f32.mrf.mxu1 }
 0x2a2   :  { %vm2015_vm8 = vcmp.gt.f32.partialorder %v1879_v11, 0.0  ;;  %v2047_v6 = vmul.f32 0.2, %v1879_v11  ;;  %v1980_v43 = vadd.f32 %v1979_v30, %v1931_v42  ;;  %v1935_v37 = vpop.f32.mrf.mxu0 }
 0x2a3   :  { %v1936_v14 = vadd.f32 %v1935_v37, %v4565_v36 }
 0x2a4   :  { %v4598_v47 = vsel %vm2015_vm8, %v1879_v11, %v2047_v6  ;;  %v2050_v5 = vmul.f32 0.2, %v1980_v43  ;;  %vm2018_vm9 = vcmp.gt.f32.partialorder %v1980_v43, 0.0 }
 0x2a6   :  { %v4605_v29 = vsel %vm2018_vm9, %v1980_v43, %v2050_v5 }
 0x2a7   :  { %v1881_v17 = vpop.f32.mrf.mxu3 }
 0x2a8   :  { %v1882_v25 = vadd.f32 %v1881_v17, %v1833_v59  ;;  %v1843_v17 = vadd.f32 %v1842_v33, %v4568_v41  ;;  %v4638_v5 = vpop.f32.mrf.mxu2 }
 0x2a9   :  { %v1981_v0 = vpop.f32.mrf.mxu1 }
 0x2aa   :  { %v1982_v20 = vadd.f32 %v1981_v0, %v1933_v56  ;;  %v1937_v48 = vpop.f32.mrf.mxu0  ;;  %v2049_v52 = vmul.f32 0.2, %v1882_v25  ;;  %vm2017_vm11 = vcmp.gt.f32.partialorder %v1882_v25, 0.0 }
 0x2ab   :  { %v1938_v54 = vadd.f32 %v1937_v48, %v4565_v36 }
 0x2ac   :  { %vm2020_vm10 = vcmp.gt.f32.partialorder %v1982_v20, 0.0  ;;  %v2052_v16 = vmul.f32 0.2, %v1982_v20  ;;  %v4612_v2 = vsel %vm2017_vm11, %v1882_v25, %v2049_v52 }
 0x2ae   :  { %v4607_v44 = vsel %vm2020_vm10, %v1982_v20, %v2052_v16 }
 0x2af   :  { %v1883_v24 = vpop.f32.mrf.mxu3  ;;  %v2111_v10 = vpack.c.bf16 %v4607_v44, %v4605_v29  ;;  %v4769_v29 = vpack.c.bf16 %v4582_v35, %v4580_v21 }
 0x2b0   :  { %v1884_v18 = vadd.f32 %v1883_v24, %v1835_v32  ;;  %v1845_v24 = vadd.f32 %v1844_v62, %v4568_v41 }
 0x2b1   :  { %v1984_v49 = vpop.f32.mrf.mxu1 }
 0x2b2   :  { %vm2019_vm12 = vcmp.gt.f32.partialorder %v1884_v18, 0.0  ;;  %v2051_v58 = vmul.f32 0.2, %v1884_v18  ;;  %v1985_v40 = vadd.f32 %v1984_v49, %v1936_v14  ;;  %v1940_v38 = vpop.f32.mrf.mxu0 }
 0x2b3   :  { %v1941_v46 = vadd.f32 %v1940_v38, %v4565_v36 }
 0x2b4   :  { %v4614_v1 = vsel %vm2019_vm12, %v1884_v18, %v2051_v58  ;;  %v2054_v34 = vmul.f32 0.2, %v1985_v40  ;;  %vm2022_vm13 = vcmp.gt.f32.partialorder %v1985_v40, 0.0 }
 0x2b6   :  { %v4621_v12 = vsel %vm2022_vm13, %v1985_v40, %v2054_v34 }
 0x2b7   :  { %v1886_v13 = vpop.f32.mrf.mxu3 }
 0x2b8   :  { %v1887_v60 = vadd.f32 %v1886_v13, %v1838_v50  ;;  %v4649_v50 = vpop.f32.mrf.mxu2 }
 0x2b9   :  { %v1986_v3 = vpop.f32.mrf.mxu1 }
 0x2ba   :  { %v1987_v26 = vadd.f32 %v1986_v3, %v1938_v54  ;;  %v1942_v4 = vpop.f32.mrf.mxu0  ;;  %v2053_v42 = vmul.f32 0.2, %v1887_v60  ;;  %vm2021_vm15 = vcmp.gt.f32.partialorder %v1887_v60, 0.0 }
 0x2bb   :  { %v1943_v25 = vadd.f32 %v1942_v4, %v4565_v36 }
 0x2bc   :  { %vm2024_vm14 = vcmp.gt.f32.partialorder %v1987_v26, 0.0  ;;  %v2056_v61 = vmul.f32 0.2, %v1987_v26  ;;  %v4630_v43 = vsel %vm2021_vm15, %v1887_v60, %v2053_v42 }
 0x2be   :  { %v4623_v39 = vsel %vm2024_vm14, %v1987_v26, %v2056_v61 }
 0x2bf   :  { %v1888_v23 = vpop.f32.mrf.mxu3  ;;  %v2113_v8 = vpack.c.bf16 %v4623_v39, %v4621_v12  ;;  %v4766_v12 = vpack.c.bf16 %v4591_v53, %v4589_v22  ;;  %v4767_v39 = vpack.c.bf16 %v4598_v47, %v4596_v55 }
 0x2c0   :  { %v1889_v7 = vadd.f32 %v1888_v23, %v1840_v57  ;;  %v1852_v4 = vpop.f32.mrf.mxu2 }
 0x2c1   :  { %v1989_v11 = vpop.f32.mrf.mxu1 }
 0x2c2   :  { %vm2023_vm1 = vcmp.gt.f32.partialorder %v1889_v7, 0.0  ;;  %v2055_v63 = vmul.f32 0.2, %v1889_v7  ;;  %v1990_v30 = vadd.f32 %v1989_v11, %v1941_v46  ;;  %v4628_v6 = vpop.f32.mrf.mxu0 }
 0x2c4   :  { %v4632_v37 = vsel %vm2023_vm1, %v1889_v7, %v2055_v63  ;;  %v2058_v48 = vmul.f32 0.2, %v1990_v30  ;;  %vm2026_vm0 = vcmp.gt.f32.partialorder %v1990_v30, 0.0 }
 0x2c5   :  { %v2112_v59 = vpack.c.bf16 %v4632_v37, %v4630_v43 }
 0x2c6   :  { %v4641_v14 = vsel %vm2026_vm0, %v1990_v30, %v2058_v48 }
 0x2c7   :  { %v1891_v56 = vpop.f32.mrf.mxu3 }
 0x2c8   :  { %v1892_v0 = vadd.f32 %v1891_v56, %v1843_v17  ;;  %v1854_v23 = vpop.f32.mrf.mxu2 }
 0x2c9   :  { %v1991_v20 = vpop.f32.mrf.mxu1 }
 0x2ca   :  { %v1992_v27 = vadd.f32 %v1991_v20, %v1943_v25  ;;  %v1947_v32 = vpop.f32.mrf.mxu0  ;;  %v2057_v58 = vmul.f32 0.2, %v1892_v0  ;;  %vm2025_vm3 = vcmp.gt.f32.partialorder %v1892_v0, 0.0 }
 0x2cc   :  { %vm2028_vm2 = vcmp.gt.f32.partialorder %v1992_v27, 0.0  ;;  %v2060_v16 = vmul.f32 0.2, %v1992_v27  ;;  %v4651_v13 = vsel %vm2025_vm3, %v1892_v0, %v2057_v58 }
 0x2ce   :  { %v4643_v52 = vsel %vm2028_vm2, %v1992_v27, %v2060_v16 }
 0x2cf   :  { %v1893_v18 = vpop.f32.mrf.mxu3  ;;  %v2115_v49 = vpack.c.bf16 %v4643_v52, %v4641_v14  ;;  %v4765_v14 = vpack.c.bf16 %v4614_v1, %v4612_v2 }
 0x2d0   :  { %v1894_v40 = vadd.f32 %v1893_v18, %v1845_v24  ;;  %v1857_v63 = vpop.f32.mrf.mxu2 }
 0x2d1   :  { %v4647_v38 = vpop.f32.mrf.mxu1  ;;  %v1858_v27 = vadd.f32 %v1857_v63, %v4568_v41  ;;  %v1855_v63 = vadd.f32 %v1854_v23, %v4568_v41 }
 0x2d2   :  { %vm2027_vm4 = vcmp.gt.f32.partialorder %v1894_v40, 0.0  ;;  %v2059_v33 = vmul.f32 0.2, %v1894_v40  ;;  %v1950_v3 = vpop.f32.mrf.mxu0 }
 0x2d4   :  { %v4653_v54 = vsel %vm2027_vm4, %v1894_v40, %v2059_v33  ;;  %v1951_v40 = vadd.f32 %v1950_v3, %v4565_v36  ;;  %v1948_v3 = vadd.f32 %v1947_v32, %v4565_v36 }
 0x2d5   :  { %v2114_v60 = vpack.c.bf16 %v4653_v54, %v4651_v13 }
 0x2d7   :  { %v4657_v34 = vpop.f32.mrf.mxu3 }
 0x2d8   :  { %v1859_v58 = vpop.f32.mrf.mxu2 }
 0x2d9   :  { %v1996_v26 = vpop.f32.mrf.mxu1 }
 0x2da   :  { %v1952_v57 = vpop.f32.mrf.mxu0 }
 0x2db   :  { %v1953_v16 = vadd.f32 %v1952_v57, %v4565_v36 }
 0x2df   :  { %v4659_v61 = vpop.f32.mrf.mxu3 }
 0x2e1   :  { %v1999_v62 = vpop.f32.mrf.mxu1 }
 0x2e2   :  { %v1955_v7 = vpop.f32.mrf.mxu0 }
 0x2e3   :  { %v1956_v17 = vadd.f32 %v1955_v7, %v4565_v36 }
 0x2e7   :  { %v1901_v46 = vpop.f32.mrf.mxu3 }
 0x2e9   :  { %v2001_v42 = vpop.f32.mrf.mxu1 }
 0x2ea   :  { %v1957_v56 = vpop.f32.mrf.mxu0  ;;  %v2002_v33 = vadd.f32 %v2001_v42, %v1953_v16 }
 0x2eb   :  { %v1958_v20 = vadd.f32 %v1957_v56, %v4565_v36 }
 0x2ec   :  { %v2068_v57 = vmul.f32 0.2, %v2002_v33  ;;  %vm2036_vm7 = vcmp.gt.f32.partialorder %v2002_v33, 0.0 }
 0x2ef   :  { %v1903_v11 = vpop.f32.mrf.mxu3 }
 0x2f1   :  { %v2004_v30 = vpop.f32.mrf.mxu1 }
 0x2f2   :  { %v2005_v25 = vadd.f32 %v2004_v30, %v1956_v17  ;;  %v1860_v30 = vadd.f32 %v1859_v58, %v4568_v41  ;;  %v2000_v17 = vadd.f32 %v1999_v62, %v1951_v40 }
 0x2f4   :  { %v2070_v24 = vmul.f32 0.2, %v2005_v25  ;;  %vm2038_vm5 = vcmp.gt.f32.partialorder %v2005_v25, 0.0  ;;  %v2066_v42 = vmul.f32 0.2, %v2000_v17  ;;  %vm2034_vm10 = vcmp.gt.f32.partialorder %v2000_v17, 0.0 }
 0x2f6   :  { %v2102_v31 = vsel %vm2038_vm5, %v2005_v25, %v2070_v24  ;;  %v1997_v25 = vadd.f32 %v1996_v26, %v1948_v3 }
 0x2f7   :  { %v1906_v0 = vpop.f32.mrf.mxu3 }
 0x2f8   :  { %v1907_v15 = vadd.f32 %v1906_v0, %v1858_v27  ;;  %v1904_v0 = vadd.f32 %v1903_v11, %v1855_v63  ;;  %v1850_v11 = vadd.f32 %v4649_v50, %v4568_v41  ;;  %v2064_v58 = vmul.f32 0.2, %v1997_v25 }
 0x2f9   :  { %v2006_v48 = vpop.f32.mrf.mxu1  ;;  %vm2032_vm12 = vcmp.gt.f32.partialorder %v1997_v25, 0.0  ;;  %v2899_v63 = vmov 0  }
 0x2fa   :  { %v2007_v18 = vadd.f32 %v2006_v48, %v1958_v20  ;;  %v2069_v51 = vmul.f32 0.2, %v1907_v15  ;;  %v1853_v48 = vadd.f32 %v1852_v4, %v4568_v41  ;;  %vm2037_vm8 = vcmp.gt.f32.partialorder %v1907_v15, 0.0  ;;  %2867 = vset.pattern.permute.xlu0 %v2899_v63 }
 0x2fb   :  { %v2067_v32 = vmul.f32 0.2, %v1904_v0  ;;  %vm2035_vm11 = vcmp.gt.f32.partialorder %v1904_v0, 0.0 }
 0x2fc   :  { %vm2040_vm6 = vcmp.gt.f32.partialorder %v2007_v18, 0.0  ;;  %v2072_v7 = vmul.f32 0.2, %v2007_v18  ;;  %v1902_v23 = vadd.f32 %v1901_v46, %v1853_v48  ;;  %v2101_v27 = vsel %vm2037_vm8, %v1907_v15, %v2069_v51 }
 0x2fd   :  { %v1899_v51 = vadd.f32 %v4659_v61, %v1850_v11  ;;  %v2096_v46 = vsel %vm2032_vm12, %v1997_v25, %v2064_v58  ;;  %v2105_v61 = vld [vmem:[%s4720_s5] sm:$0x3]  ;;  %s2900_s5 = smov [#allocation3]  }
 0x2fe   :  { %v2104_v56 = vsel %vm2040_vm6, %v2007_v18, %v2072_v7  ;;  %v2098_v18 = vsel %vm2034_vm10, %v2000_v17, %v2066_v42  ;;  %v2065_v40 = vmul.f32 0.2, %v1902_v23  ;;  %vm2033_vm13 = vcmp.gt.f32.partialorder %v1902_v23, 0.0  ;;  %2130 = vst [vmem:[#allocation1] ss:$9 sm:$0xff] %v2105_v61  ;;  %s2172_s16 = sshll.u32 %s2900_s5, 4  ;;  %s2173_s16 = int_to_ptr.vmem [resolvable:$true] %s2172_s16 }
 0x2ff   :  { %v2121_v9 = vpack.c.bf16 %v2104_v56, %v2102_v31  ;;  %v1908_v28 = vpop.f32.mrf.mxu3  ;;  %v1946_v31 = vadd.f32 %v4628_v6, %v4565_v36  ;;  %v1848_v36 = vadd.f32 %v4638_v5, %v4568_v41  ;;  %v2099_v6 = vsel %vm2035_vm11, %v1904_v0, %v2067_v32 }
 0x300   :  { %v1909_v20 = vadd.f32 %v1908_v28, %v1860_v30  ;;  %v2100_v28 = vsel %vm2036_vm7, %v2002_v33, %v2068_v57  ;;  %v2097_v26 = vsel %vm2033_vm13, %v1902_v23, %v2065_v40  ;;  %v2063_v7 = vmul.f32 0.2, %v1899_v51 }
 0x301   :  { %2148 = vmatpush.bf16.xpose.msrb.mxu3 %v2121_v9  ;;  %v1995_v4 = vadd.f32 %v4647_v38, %v1946_v31  ;;  %v2119_v9 = vpack.c.bf16 %v2100_v28, %v2098_v18  ;;  %v1897_v38 = vadd.f32 %v4657_v34, %v1848_v36  ;;  %v2118_v33 = vpack.c.bf16 %v2099_v6, %v2097_v26  ;;  %v2122_v34 = vld [vmem:[#allocation2] sm:$0x1] }
 0x302   :  { %vm2039_vm9 = vcmp.gt.f32.partialorder %v1909_v20, 0.0  ;;  %v2071_v62 = vmul.f32 0.2, %v1909_v20  ;;  %vm2031_vm15 = vcmp.gt.f32.partialorder %v1899_v51, 0.0  ;;  %2125 = vperm.xlu0 %2867, %v2122_v34  }
 0x303   :  { %v2062_v15 = vmul.f32 0.2, %v1995_v4  ;;  %vm2030_vm14 = vcmp.gt.f32.partialorder %v1995_v4, 0.0  ;;  %v2061_v17 = vmul.f32 0.2, %v1897_v38  ;;  %vm2029_vm1 = vcmp.gt.f32.partialorder %v1897_v38, 0.0 }
 0x304   :  { %v2103_v16 = vsel %vm2039_vm9, %v1909_v20, %v2071_v62  ;;  %v2095_v56 = vsel %vm2031_vm15, %v1899_v51, %v2063_v7 }
 0x305   :  { %v2120_v24 = vpack.c.bf16 %v2103_v16, %v2101_v27  ;;  %v2094_v50 = vsel %vm2030_vm14, %v1995_v4, %v2062_v15  ;;  %v2093_v41 = vsel %vm2029_vm1, %v1897_v38, %v2061_v17  ;;  %v2132_v43 = vld [vmem:[#allocation1 + $0x9] sm:$0xff]  ;;  %v2131_v44 = vld [vmem:[#allocation1] sm:$0xff] }
 0x306   :  { %v2117_v30 = vpack.c.bf16 %v2096_v46, %v2094_v50  ;;  %v2116_v5 = vpack.c.bf16 %v2095_v56, %v2093_v41 }
 0x307   :  { %2135 = vmatpush.bf16.xpose.msrb.mxu2 %v2120_v24 }
 0x309   :  { %2149 = vmatpush.bf16.xpose.msrb.mxu3 %v2119_v9 }
 0x30f   :  { %2136 = vmatpush.bf16.xpose.msrb.mxu2 %v2118_v33 }
 0x311   :  { %2150 = vmatpush.bf16.xpose.msrb.mxu3 %v2117_v30 }
 0x317   :  { %2137 = vmatpush.bf16.xpose.msrb.mxu2 %v2116_v5 }
 0x319   :  { %2151 = vmatpush.bf16.xpose.msrb.mxu3 %v2115_v49 }
 0x31f   :  { %2138 = vmatpush.bf16.xpose.msrb.mxu2 %v2114_v60 }
 0x321   :  { %2152 = vmatpush.bf16.xpose.msrb.mxu3 %v2113_v8  ;;  %v4768_v8 = vpack.c.bf16 %v4575_v19, %v4573_v45 }
 0x327   :  { %2139 = vmatpush.bf16.xpose.msrb.mxu2 %v2112_v59 }
 0x329   :  { %2153 = vmatpush.bf16.xpose.msrb.mxu3 %v2111_v10 }
 0x32f   :  { %2140 = vmatpush.bf16.xpose.msrb.mxu2 %v4765_v14 }
 0x331   :  { %2154 = vmatpush.bf16.xpose.msrb.mxu3 %v4766_v12 }
 0x337   :  { %2141 = vmatpush.bf16.xpose.msrb.mxu2 %v4767_v39 }
 0x339   :  { %2155 = vmatpush.bf16.xpose.msrb.mxu3 %v4768_v8 }
 0x33f   :  { %2142 = vmatpush.bf16.xpose.msrb.mxu2 %v4769_v29 }
 0x340   :  { %2156 = vmatmul.bf16.vlgmr.msrb.gmra.mxu3 %v2132_v43 }
 0x346   :  { %2143 = vmatmul.bf16.vlgmr.msrb.gmra.mxu2 %v2131_v44 }
 0x374   :  { %v2126_v2 = vpop.permute.xlu0 %2125 }
 0x375   :  { %v2128_v22 = vperm.slane %v2126_v2, 0 }
 0x3c3   :  { %v2157_v10 = vpop.f32.mrf.mxu3 }
 0x3c9   :  { %v2144_v53 = vpop.f32.mrf.mxu2 }
 0x3ca   :  { %v2145_v1 = vadd.f32 %v2144_v53, %v2128_v22 }
 0x3cb   :  { %v2159_v37 = vpop.f32.mrf.mxu3 }
 0x3cc   :  { %v2158_v55 = vadd.f32 %v2157_v10, %v2145_v1 }
 0x3ce   :  { %v2161_v47 = vsub.f32 0.0, %v2158_v55 }
 0x3d0   :  { %v2162_v59 = vmul.f32 1.442695, %v2161_v47 }
 0x3d1   :  { %v2146_v52 = vpop.f32.mrf.mxu2 }
 0x3d2   :  { %2868 = vpow2.f32 %v2162_v59 }
 0x3d8   :  { %v2869_v45 = vpop.eup %2868 }
 0x3d9   :  { %v2164_v19 = vadd.f32 1.0, %v2869_v45 }
 0x3db   :  { %2870 = vrcp.f32 %v2164_v19 }
 0x3e1   :  { %v2871_v21 = vpop.eup %2870 }
 0x3e2   :  { %2166 = vst [vmem:[#allocation3] sm:$0x1] %v2871_v21 }
 0x3e3   :  { %2177 = dma.vmem_to_hbm [thread:$0]  %s2173_s16, 16, %s2175_s1, [#allocation4]  }
 0x3e4   :  { %2897 = dma.done.wait [#allocation4], 16  }
 0x3e5   :  { %2898 = vsyncadd [#allocation4], 4294967280 }
 0x3e6   :  { %2182 = vsyncpa [#allocation4], 1 }

</bundles_post_ra>
